<compile_context>
chip_gen: v5e
topology: v5e:2x2
jax: 0.10.0
libtpu: 0.0.40
codegen_flags: <defaults>
</compile_context>

<pallas_src>
import functools

import jax
import jax.numpy as jnp
from jax.experimental import pallas as pl
from jax.experimental.pallas import tpu as pltpu

BN_EPS = 1e-3

# Scaled-down EfficientNet trunk dimensions (synthetic weights).
C_IN, C_STEM, C_EXP, C_SE, C_PROJ, C_HEAD = 3, 16, 64, 4, 24, 64
K_STEM = 9 * C_IN  # 3x3 stem taps x input channels = 27


def _swish(v):
    return v * jax.nn.sigmoid(v)


# --------------------------------------------------------------------------
# Single fused kernel: stem -> MBConv (expand / depthwise / SE / project)
# -> head 1x1 -> global average pool.  One grid step == one image.
# --------------------------------------------------------------------------
def _fused_backbone_kernel(
    patches_ref,                 # (1, M, K_STEM)          bf16  (stem im2col patches)
    w_stem_ref, b_stem_ref,      # (K_STEM, C_STEM) bf16 / (1, C_STEM) f32   BN folded
    w_exp_ref, b_exp_ref,        # (C_STEM, C_EXP)  bf16 / (1, C_EXP)  f32   BN folded
    w_dw_ref, b_dw_ref,          # (9, C_EXP)       f32  / (1, C_EXP)  f32   BN folded
    w_se1_ref, b_se1_ref,        # (C_EXP, C_SE)    bf16 / (1, C_SE)   f32
    w_se2_ref, b_se2_ref,        # (C_SE, C_EXP)    bf16 / (1, C_EXP)  f32
    w_proj_ref, b_proj_ref,      # (C_EXP, C_PROJ)  bf16 / (1, C_PROJ) f32   BN folded
    w_head_ref, b_head_ref,      # (C_PROJ, C_HEAD) bf16 / (1, C_HEAD) f32   BN folded
    out_ref,                     # (1, 1, C_HEAD)   f32
    dwpad_ref,                   # VMEM scratch (oh+2, ow+2, C_EXP) f32
    *, oh, ow,
):
    f32 = jnp.float32
    bf16 = jnp.bfloat16
    m = oh * ow

    # ---- stem: 3x3 stride-2 conv (im2col patches) + folded BN + swish ----
    stem = jnp.dot(patches_ref[0], w_stem_ref[...],
                   preferred_element_type=f32) + b_stem_ref[...]
    stem = _swish(stem)                                        # (m, C_STEM) f32

    # ---- MBConv expand 1x1 + folded BN + swish ----
    h = jnp.dot(stem.astype(bf16), w_exp_ref[...],
                preferred_element_type=f32) + b_exp_ref[...]
    h = _swish(h)                                              # (m, C_EXP) f32

    # ---- depthwise 3x3 (stride 1, "same" pad) + folded BN + swish -------
    # Zero-padded VMEM scratch; halo is rebuilt every step (scratch is
    # per-core, so no cross-step init under "parallel" semantics).
    dwpad_ref[...] = jnp.zeros_like(dwpad_ref)
    dwpad_ref[1:oh + 1, 1:ow + 1, :] = h.reshape(oh, ow, C_EXP)
    acc = jnp.zeros((oh, ow, C_EXP), f32)
    for dx in range(3):
        # one sublane-shifted load per dx phase; dy shifts are on the free axis
        xs = dwpad_ref[:, dx:dx + ow, :]                       # (oh+2, ow, C_EXP)
        for dy in range(3):
            acc = acc + xs[dy:dy + oh] * w_dw_ref[dy * 3 + dx]
    hdw = _swish(acc + b_dw_ref[0])                            # (oh, ow, C_EXP)
    hdw2 = hdw.reshape(m, C_EXP)

    # ---- squeeze & excite ----
    pooled = jnp.mean(hdw2, axis=0, keepdims=True)             # (1, C_EXP)
    se = jnp.dot(pooled.astype(bf16), w_se1_ref[...],
                 preferred_element_type=f32) + b_se1_ref[...]
    se = _swish(se)                                            # (1, C_SE)
    gate = jax.nn.sigmoid(
        jnp.dot(se.astype(bf16), w_se2_ref[...],
                preferred_element_type=f32) + b_se2_ref[...])  # (1, C_EXP)
    hse = hdw2 * gate                                          # (m, C_EXP)

    # ---- project 1x1 + folded BN (no activation) ----
    hp = jnp.dot(hse.astype(bf16), w_proj_ref[...],
                 preferred_element_type=f32) + b_proj_ref[...]  # (m, C_PROJ)

    # ---- head 1x1 + folded BN + swish ----
    hh = jnp.dot(hp.astype(bf16), w_head_ref[...],
                 preferred_element_type=f32) + b_head_ref[...]
    hh = _swish(hh)                                            # (m, C_HEAD)

    # ---- global average pool fused into the epilogue ----
    out_ref[...] = jnp.mean(hh, axis=0, keepdims=True).reshape(1, 1, C_HEAD)


# --------------------------------------------------------------------------
# Host-side glue: TF-"same" padding, stem im2col, BN folding, weight layout.
# --------------------------------------------------------------------------
def _same_pad(in_size, k, stride):
    out = -(-in_size // stride)
    pad_total = max((out - 1) * stride + k - in_size, 0)
    return pad_total // 2, pad_total - pad_total // 2


def _stem_patches(x):
    """x: (B, H, W, C_IN) -> (B, oh*ow, 9*C_IN) patches for the stride-2 stem."""
    B, H, W, C = x.shape
    ph0, ph1 = _same_pad(H, 3, 2)
    pw0, pw1 = _same_pad(W, 3, 2)
    xp = jnp.pad(x, ((0, 0), (ph0, ph1), (pw0, pw1), (0, 0)))
    oh = (xp.shape[1] - 3) // 2 + 1
    ow = (xp.shape[2] - 3) // 2 + 1
    cols = [xp[:, dy:dy + 2 * oh:2, dx:dx + 2 * ow:2, :]
            for dy in range(3) for dx in range(3)]
    patches = jnp.concatenate(cols, axis=-1)                   # (B, oh, ow, 9*C)
    return patches.reshape(B, oh * ow, 9 * C), oh, ow


def _fold_bn(bn):
    gamma, beta, mean, var = bn
    scale = gamma / jnp.sqrt(var + BN_EPS)
    bias = beta - mean * scale
    return scale, bias


def _const_spec(shape):
    nd = len(shape)
    return pl.BlockSpec(shape, lambda b, _nd=nd: (0,) * _nd)


# --------------------------------------------------------------------------
# Backbone (scaled-down EfficientNet trunk) — parameters + forward
# --------------------------------------------------------------------------
def init_params(key):
    ks = jax.random.split(key, 16)

    def w(k, shape, s=0.1):
        return jax.random.normal(k, shape, jnp.float32) * s

    def bn(k, c):
        k1, k2, k3, k4 = jax.random.split(k, 4)
        gamma = 1.0 + 0.1 * jax.random.normal(k1, (c,), jnp.float32)
        beta = 0.1 * jax.random.normal(k2, (c,), jnp.float32)
        mean = 0.1 * jax.random.normal(k3, (c,), jnp.float32)
        var = 1.0 + 0.1 * jnp.abs(jax.random.normal(k4, (c,), jnp.float32))
        return (gamma, beta, mean, var)

    p = {}
    p['stem_w'] = w(ks[0], (C_STEM, C_IN, 3, 3))               # PyTorch OIHW
    p['stem_bn'] = bn(ks[1], C_STEM)
    p['exp_w'] = w(ks[2], (C_EXP, C_STEM, 1, 1))
    p['exp_bn'] = bn(ks[3], C_EXP)
    dw = w(ks[4], (C_EXP, 1, 3, 3))                            # depthwise OIHW
    p['dw_w'] = jnp.transpose(dw.reshape(C_EXP, 3, 3), (1, 2, 0))  # -> (3,3,C)
    p['dw_bn'] = bn(ks[5], C_EXP)
    p['se_w1'] = jnp.transpose(w(ks[6], (C_SE, C_EXP, 1, 1)).reshape(C_SE, C_EXP))
    p['se_b1'] = w(ks[7], (C_SE,))
    p['se_w2'] = jnp.transpose(w(ks[8], (C_EXP, C_SE, 1, 1)).reshape(C_EXP, C_SE))
    p['se_b2'] = w(ks[9], (C_EXP,))
    p['proj_w'] = w(ks[10], (C_PROJ, C_EXP, 1, 1))
    p['proj_bn'] = bn(ks[11], C_PROJ)
    p['head_w'] = w(ks[12], (C_HEAD, C_PROJ, 1, 1))
    p['head_bn'] = bn(ks[13], C_HEAD)
    return p


def backbone_forward(images_nchw, params):
    """images_nchw: (B, 3, H, W) float32 -> (B, C_HEAD) flattened features."""
    x = jnp.transpose(images_nchw, (0, 2, 3, 1)).astype(jnp.float32)  # NHWC
    B = x.shape[0]

    # stem im2col (host side; stride-2 / 3-channel => no HBM amplification in bf16)
    patches, oh, ow = _stem_patches(x)
    patches = patches.astype(jnp.bfloat16)
    m = oh * ow

    # Fold BatchNorm scales into the conv weights; cast matmul weights to bf16.
    s, b = _fold_bn(params['stem_bn'])
    w_stem = (jnp.transpose(params['stem_w'], (2, 3, 1, 0))
              .reshape(K_STEM, C_STEM) * s).astype(jnp.bfloat16)
    b_stem = b.reshape(1, C_STEM).astype(jnp.float32)

    s, b = _fold_bn(params['exp_bn'])
    w_exp = (params['exp_w'].reshape(C_EXP, C_STEM).T * s).astype(jnp.bfloat16)
    b_exp = b.reshape(1, C_EXP).astype(jnp.float32)

    s, b = _fold_bn(params['dw_bn'])
    w_dw = (params['dw_w'] * s).reshape(9, C_EXP).astype(jnp.float32)
    b_dw = b.reshape(1, C_EXP).astype(jnp.float32)

    w_se1 = params['se_w1'].astype(jnp.bfloat16)
    b_se1 = params['se_b1'].reshape(1, C_SE).astype(jnp.float32)
    w_se2 = params['se_w2'].astype(jnp.bfloat16)
    b_se2 = params['se_b2'].reshape(1, C_EXP).astype(jnp.float32)

    s, b = _fold_bn(params['proj_bn'])
    w_proj = (params['proj_w'].reshape(C_PROJ, C_EXP).T * s).astype(jnp.bfloat16)
    b_proj = b.reshape(1, C_PROJ).astype(jnp.float32)

    s, b = _fold_bn(params['head_bn'])
    w_head = (params['head_w'].reshape(C_HEAD, C_PROJ).T * s).astype(jnp.bfloat16)
    b_head = b.reshape(1, C_HEAD).astype(jnp.float32)

    in_specs = [
        pl.BlockSpec((1, m, K_STEM), lambda b_: (b_, 0, 0)),   # patches (per image)
        _const_spec((K_STEM, C_STEM)), _const_spec((1, C_STEM)),
        _const_spec((C_STEM, C_EXP)), _const_spec((1, C_EXP)),
        _const_spec((9, C_EXP)), _const_spec((1, C_EXP)),
        _const_spec((C_EXP, C_SE)), _const_spec((1, C_SE)),
        _const_spec((C_SE, C_EXP)), _const_spec((1, C_EXP)),
        _const_spec((C_EXP, C_PROJ)), _const_spec((1, C_PROJ)),
        _const_spec((C_PROJ, C_HEAD)), _const_spec((1, C_HEAD)),
    ]

    feats3 = pl.pallas_call(
        functools.partial(_fused_backbone_kernel, oh=oh, ow=ow),
        out_shape=jax.ShapeDtypeStruct((B, 1, C_HEAD), jnp.float32),
        grid=(B,),
        in_specs=in_specs,
        out_specs=pl.BlockSpec((1, 1, C_HEAD), lambda b_: (b_, 0, 0)),
        scratch_shapes=[pltpu.VMEM((oh + 2, ow + 2, C_EXP), jnp.float32)],
        compiler_params=pltpu.CompilerParams(
            dimension_semantics=("parallel",),           # megacore on v7x
            vmem_limit_bytes=48 * 1024 * 1024,           # fits v7x's 64 MiB VMEM
        ),
    )(patches, w_stem, b_stem, w_exp, b_exp, w_dw, b_dw,
      w_se1, b_se1, w_se2, b_se2, w_proj, b_proj, w_head, b_head)

    return feats3.reshape(B, C_HEAD)                     # == flatten(1)


if __name__ == "__main__":
    key = jax.random.PRNGKey(0)
    k_img, k_par = jax.random.split(key)
    images = jax.random.normal(k_img, (2, 3, 16, 16), jnp.float32)  # NCHW
    params = init_params(k_par)

    fwd = jax.jit(backbone_forward)
    feats = jax.block_until_ready(fwd(images, params))
    assert feats.shape == (2, C_HEAD), feats.shape
    assert bool(jnp.all(jnp.isfinite(feats)))
    print("KERNEL_OK")
</pallas_src>

<mosaic_0001>
module attributes {stable_mosaic.version = 11 : i64} {
  func.func @_fused_backbone_kernel(%arg0: i32, %arg1: memref<1x64x27xbf16, #tpu.memory_space<vmem>>, %arg2: memref<27x16xbf16, #tpu.memory_space<vmem>>, %arg3: memref<1x16xf32, #tpu.memory_space<vmem>>, %arg4: memref<16x64xbf16, #tpu.memory_space<vmem>>, %arg5: memref<1x64xf32, #tpu.memory_space<vmem>>, %arg6: memref<9x64xf32, #tpu.memory_space<vmem>>, %arg7: memref<1x64xf32, #tpu.memory_space<vmem>>, %arg8: memref<64x4xbf16, #tpu.memory_space<vmem>>, %arg9: memref<1x4xf32, #tpu.memory_space<vmem>>, %arg10: memref<4x64xbf16, #tpu.memory_space<vmem>>, %arg11: memref<1x64xf32, #tpu.memory_space<vmem>>, %arg12: memref<64x24xbf16, #tpu.memory_space<vmem>>, %arg13: memref<1x24xf32, #tpu.memory_space<vmem>>, %arg14: memref<24x64xbf16, #tpu.memory_space<vmem>>, %arg15: memref<1x64xf32, #tpu.memory_space<vmem>>, %arg16: memref<1x1x64xf32, #tpu.memory_space<vmem>>, %arg17: memref<10x10x64xf32, #tpu.memory_space<vmem>>) attributes {dimension_semantics = [#tpu.dimension_semantics<parallel>], iteration_bounds = array<i64: 2>, scalar_prefetch = 0 : i64, scratch_operands = 1 : i64, tpu.core_type = #tpu.core_type<tc>, window_params = [{transform_indices = @transform_0, window_bounds = array<i64: 1, 64, 27>}, {pipeline_mode = #tpu.pipeline_mode<synchronous>, transform_indices = @transform_1, window_bounds = array<i64: 27, 16>}, {pipeline_mode = #tpu.pipeline_mode<synchronous>, transform_indices = @transform_2, window_bounds = array<i64: 1, 16>}, {pipeline_mode = #tpu.pipeline_mode<synchronous>, transform_indices = @transform_3, window_bounds = array<i64: 16, 64>}, {pipeline_mode = #tpu.pipeline_mode<synchronous>, transform_indices = @transform_4, window_bounds = array<i64: 1, 64>}, {pipeline_mode = #tpu.pipeline_mode<synchronous>, transform_indices = @transform_5, window_bounds = array<i64: 9, 64>}, {pipeline_mode = #tpu.pipeline_mode<synchronous>, transform_indices = @transform_6, window_bounds = array<i64: 1, 64>}, {pipeline_mode = #tpu.pipeline_mode<synchronous>, transform_indices = @transform_7, window_bounds = array<i64: 64, 4>}, {pipeline_mode = #tpu.pipeline_mode<synchronous>, transform_indices = @transform_8, window_bounds = array<i64: 1, 4>}, {pipeline_mode = #tpu.pipeline_mode<synchronous>, transform_indices = @transform_9, window_bounds = array<i64: 4, 64>}, {pipeline_mode = #tpu.pipeline_mode<synchronous>, transform_indices = @transform_10, window_bounds = array<i64: 1, 64>}, {pipeline_mode = #tpu.pipeline_mode<synchronous>, transform_indices = @transform_11, window_bounds = array<i64: 64, 24>}, {pipeline_mode = #tpu.pipeline_mode<synchronous>, transform_indices = @transform_12, window_bounds = array<i64: 1, 24>}, {pipeline_mode = #tpu.pipeline_mode<synchronous>, transform_indices = @transform_13, window_bounds = array<i64: 24, 64>}, {pipeline_mode = #tpu.pipeline_mode<synchronous>, transform_indices = @transform_14, window_bounds = array<i64: 1, 64>}, {transform_indices = @transform_15, window_bounds = array<i64: 1, 1, 64>}]} {
    %c0 = arith.constant 0 : index
    %c0_0 = arith.constant 0 : index
    %c0_1 = arith.constant 0 : index
    %0 = vector.load %arg1[%c0, %c0_0, %c0_1] : memref<1x64x27xbf16, #tpu.memory_space<vmem>>, vector<1x64x27xbf16>
    %1 = vector.shape_cast %0 : vector<1x64x27xbf16> to vector<64x27xbf16>
    %c0_2 = arith.constant 0 : index
    %c0_3 = arith.constant 0 : index
    %2 = vector.load %arg2[%c0_2, %c0_3] : memref<27x16xbf16, #tpu.memory_space<vmem>>, vector<27x16xbf16>
    %cst = arith.constant dense<0.000000e+00> : vector<64x16xf32>
    %3 = tpu.matmul %1, %2, %cst {dimension_numbers = #tpu.dot_dimension_numbers<[1], [0], [0], [1], [0, 0, 1, 1], [], []>} : vector<64x27xbf16>, vector<27x16xbf16>, vector<64x16xf32> -> vector<64x16xf32>
    %c0_4 = arith.constant 0 : index
    %c0_5 = arith.constant 0 : index
    %4 = vector.load %arg3[%c0_4, %c0_5] : memref<1x16xf32, #tpu.memory_space<vmem>>, vector<1x16xf32>
    %5 = vector.broadcast %4 : vector<1x16xf32> to vector<64x16xf32>
    %6 = arith.addf %3, %5 : vector<64x16xf32>
    %7 = arith.negf %6 : vector<64x16xf32>
    %8 = math.exp %7 : vector<64x16xf32>
    %cst_6 = arith.constant 1.000000e+00 : f32
    %9 = vector.broadcast %cst_6 : f32 to vector<64x16xf32>
    %10 = arith.addf %9, %8 : vector<64x16xf32>
    %11 = arith.divf %9, %10 : vector<64x16xf32>
    %12 = arith.mulf %6, %11 : vector<64x16xf32>
    %13 = arith.truncf %12 : vector<64x16xf32> to vector<64x16xbf16>
    %c0_7 = arith.constant 0 : index
    %c0_8 = arith.constant 0 : index
    %14 = vector.load %arg4[%c0_7, %c0_8] : memref<16x64xbf16, #tpu.memory_space<vmem>>, vector<16x64xbf16>
    %cst_9 = arith.constant dense<0.000000e+00> : vector<64x64xf32>
    %15 = tpu.matmul %13, %14, %cst_9 {dimension_numbers = #tpu.dot_dimension_numbers<[1], [0], [0], [1], [0, 0, 1, 1], [], []>} : vector<64x16xbf16>, vector<16x64xbf16>, vector<64x64xf32> -> vector<64x64xf32>
    %c0_10 = arith.constant 0 : index
    %c0_11 = arith.constant 0 : index
    %16 = vector.load %arg5[%c0_10, %c0_11] : memref<1x64xf32, #tpu.memory_space<vmem>>, vector<1x64xf32>
    %17 = vector.broadcast %16 : vector<1x64xf32> to vector<64x64xf32>
    %18 = arith.addf %15, %17 : vector<64x64xf32>
    %19 = arith.negf %18 : vector<64x64xf32>
    %20 = math.exp %19 : vector<64x64xf32>
    %cst_12 = arith.constant 1.000000e+00 : f32
    %21 = vector.broadcast %cst_12 : f32 to vector<64x64xf32>
    %22 = arith.addf %21, %20 : vector<64x64xf32>
    %23 = arith.divf %21, %22 : vector<64x64xf32>
    %24 = arith.mulf %18, %23 : vector<64x64xf32>
    %cst_13 = arith.constant 0.000000e+00 : f32
    %25 = vector.broadcast %cst_13 : f32 to vector<10x10x64xf32>
    %c0_14 = arith.constant 0 : index
    %c0_15 = arith.constant 0 : index
    %c0_16 = arith.constant 0 : index
    %26 = vector.load %arg17[%c0_14, %c0_15, %c0_16] : memref<10x10x64xf32, #tpu.memory_space<vmem>>, vector<10x10x64xf32>
    tpu.vector_store %arg17[%c0_14, %c0_15, %c0_16], %25 {strides = array<i32>} : memref<10x10x64xf32, #tpu.memory_space<vmem>>, vector<10x10x64xf32>,
    %27 = vector.shape_cast %24 : vector<64x64xf32> to vector<8x8x64xf32>
    %c1 = arith.constant 1 : index
    %c1_17 = arith.constant 1 : index
    %c0_18 = arith.constant 0 : index
    %28 = vector.load %arg17[%c1, %c1_17, %c0_18] : memref<10x10x64xf32, #tpu.memory_space<vmem>>, vector<8x8x64xf32>
    tpu.vector_store %arg17[%c1, %c1_17, %c0_18], %27 {strides = array<i32>} : memref<10x10x64xf32, #tpu.memory_space<vmem>>, vector<8x8x64xf32>,
    %cst_19 = arith.constant 0.000000e+00 : f32
    %29 = vector.broadcast %cst_19 : f32 to vector<8x8x64xf32>
    %c0_20 = arith.constant 0 : index
    %c0_21 = arith.constant 0 : index
    %c0_22 = arith.constant 0 : index
    %30 = vector.load %arg17[%c0_20, %c0_21, %c0_22] : memref<10x10x64xf32, #tpu.memory_space<vmem>>, vector<10x8x64xf32>
    %31 = vector.extract_strided_slice %30 {offsets = [0, 0, 0], sizes = [8, 8, 64], strides = [1, 1, 1]} : vector<10x8x64xf32> to vector<8x8x64xf32>
    %c0_23 = arith.constant 0 : index
    %c0_24 = arith.constant 0 : index
    %32 = vector.load %arg6[%c0_23, %c0_24] : memref<9x64xf32, #tpu.memory_space<vmem>>, vector<1x64xf32>
    %33 = vector.shape_cast %32 : vector<1x64xf32> to vector<64xf32>
    %34 = vector.shape_cast %33 : vector<64xf32> to vector<1x1x64xf32>
    %35 = vector.broadcast %34 : vector<1x1x64xf32> to vector<8x8x64xf32>
    %36 = arith.mulf %31, %35 : vector<8x8x64xf32>
    %37 = arith.addf %29, %36 : vector<8x8x64xf32>
    %38 = vector.extract_strided_slice %30 {offsets = [1, 0, 0], sizes = [8, 8, 64], strides = [1, 1, 1]} : vector<10x8x64xf32> to vector<8x8x64xf32>
    %c3 = arith.constant 3 : index
    %c0_25 = arith.constant 0 : index
    %39 = vector.load %arg6[%c3, %c0_25] : memref<9x64xf32, #tpu.memory_space<vmem>>, vector<1x64xf32>
    %40 = vector.shape_cast %39 : vector<1x64xf32> to vector<64xf32>
    %41 = vector.shape_cast %40 : vector<64xf32> to vector<1x1x64xf32>
    %42 = vector.broadcast %41 : vector<1x1x64xf32> to vector<8x8x64xf32>
    %43 = arith.mulf %38, %42 : vector<8x8x64xf32>
    %44 = arith.addf %37, %43 : vector<8x8x64xf32>
    %45 = vector.extract_strided_slice %30 {offsets = [2, 0, 0], sizes = [8, 8, 64], strides = [1, 1, 1]} : vector<10x8x64xf32> to vector<8x8x64xf32>
    %c6 = arith.constant 6 : index
    %c0_26 = arith.constant 0 : index
    %46 = vector.load %arg6[%c6, %c0_26] : memref<9x64xf32, #tpu.memory_space<vmem>>, vector<1x64xf32>
    %47 = vector.shape_cast %46 : vector<1x64xf32> to vector<64xf32>
    %48 = vector.shape_cast %47 : vector<64xf32> to vector<1x1x64xf32>
    %49 = vector.broadcast %48 : vector<1x1x64xf32> to vector<8x8x64xf32>
    %50 = arith.mulf %45, %49 : vector<8x8x64xf32>
    %51 = arith.addf %44, %50 : vector<8x8x64xf32>
    %c0_27 = arith.constant 0 : index
    %c1_28 = arith.constant 1 : index
    %c0_29 = arith.constant 0 : index
    %52 = vector.load %arg17[%c0_27, %c1_28, %c0_29] : memref<10x10x64xf32, #tpu.memory_space<vmem>>, vector<10x8x64xf32>
    %53 = vector.extract_strided_slice %52 {offsets = [0, 0, 0], sizes = [8, 8, 64], strides = [1, 1, 1]} : vector<10x8x64xf32> to vector<8x8x64xf32>
    %c1_30 = arith.constant 1 : index
    %c0_31 = arith.constant 0 : index
    %54 = vector.load %arg6[%c1_30, %c0_31] : memref<9x64xf32, #tpu.memory_space<vmem>>, vector<1x64xf32>
    %55 = vector.shape_cast %54 : vector<1x64xf32> to vector<64xf32>
    %56 = vector.shape_cast %55 : vector<64xf32> to vector<1x1x64xf32>
    %57 = vector.broadcast %56 : vector<1x1x64xf32> to vector<8x8x64xf32>
    %58 = arith.mulf %53, %57 : vector<8x8x64xf32>
    %59 = arith.addf %51, %58 : vector<8x8x64xf32>
    %60 = vector.extract_strided_slice %52 {offsets = [1, 0, 0], sizes = [8, 8, 64], strides = [1, 1, 1]} : vector<10x8x64xf32> to vector<8x8x64xf32>
    %c4 = arith.constant 4 : index
    %c0_32 = arith.constant 0 : index
    %61 = vector.load %arg6[%c4, %c0_32] : memref<9x64xf32, #tpu.memory_space<vmem>>, vector<1x64xf32>
    %62 = vector.shape_cast %61 : vector<1x64xf32> to vector<64xf32>
    %63 = vector.shape_cast %62 : vector<64xf32> to vector<1x1x64xf32>
    %64 = vector.broadcast %63 : vector<1x1x64xf32> to vector<8x8x64xf32>
    %65 = arith.mulf %60, %64 : vector<8x8x64xf32>
    %66 = arith.addf %59, %65 : vector<8x8x64xf32>
    %67 = vector.extract_strided_slice %52 {offsets = [2, 0, 0], sizes = [8, 8, 64], strides = [1, 1, 1]} : vector<10x8x64xf32> to vector<8x8x64xf32>
    %c7 = arith.constant 7 : index
    %c0_33 = arith.constant 0 : index
    %68 = vector.load %arg6[%c7, %c0_33] : memref<9x64xf32, #tpu.memory_space<vmem>>, vector<1x64xf32>
    %69 = vector.shape_cast %68 : vector<1x64xf32> to vector<64xf32>
    %70 = vector.shape_cast %69 : vector<64xf32> to vector<1x1x64xf32>
    %71 = vector.broadcast %70 : vector<1x1x64xf32> to vector<8x8x64xf32>
    %72 = arith.mulf %67, %71 : vector<8x8x64xf32>
    %73 = arith.addf %66, %72 : vector<8x8x64xf32>
    %c0_34 = arith.constant 0 : index
    %c2 = arith.constant 2 : index
    %c0_35 = arith.constant 0 : index
    %74 = vector.load %arg17[%c0_34, %c2, %c0_35] : memref<10x10x64xf32, #tpu.memory_space<vmem>>, vector<10x8x64xf32>
    %75 = vector.extract_strided_slice %74 {offsets = [0, 0, 0], sizes = [8, 8, 64], strides = [1, 1, 1]} : vector<10x8x64xf32> to vector<8x8x64xf32>
    %c2_36 = arith.constant 2 : index
    %c0_37 = arith.constant 0 : index
    %76 = vector.load %arg6[%c2_36, %c0_37] : memref<9x64xf32, #tpu.memory_space<vmem>>, vector<1x64xf32>
    %77 = vector.shape_cast %76 : vector<1x64xf32> to vector<64xf32>
    %78 = vector.shape_cast %77 : vector<64xf32> to vector<1x1x64xf32>
    %79 = vector.broadcast %78 : vector<1x1x64xf32> to vector<8x8x64xf32>
    %80 = arith.mulf %75, %79 : vector<8x8x64xf32>
    %81 = arith.addf %73, %80 : vector<8x8x64xf32>
    %82 = vector.extract_strided_slice %74 {offsets = [1, 0, 0], sizes = [8, 8, 64], strides = [1, 1, 1]} : vector<10x8x64xf32> to vector<8x8x64xf32>
    %c5 = arith.constant 5 : index
    %c0_38 = arith.constant 0 : index
    %83 = vector.load %arg6[%c5, %c0_38] : memref<9x64xf32, #tpu.memory_space<vmem>>, vector<1x64xf32>
    %84 = vector.shape_cast %83 : vector<1x64xf32> to vector<64xf32>
    %85 = vector.shape_cast %84 : vector<64xf32> to vector<1x1x64xf32>
    %86 = vector.broadcast %85 : vector<1x1x64xf32> to vector<8x8x64xf32>
    %87 = arith.mulf %82, %86 : vector<8x8x64xf32>
    %88 = arith.addf %81, %87 : vector<8x8x64xf32>
    %89 = vector.extract_strided_slice %74 {offsets = [2, 0, 0], sizes = [8, 8, 64], strides = [1, 1, 1]} : vector<10x8x64xf32> to vector<8x8x64xf32>
    %c8 = arith.constant 8 : index
    %c0_39 = arith.constant 0 : index
    %90 = vector.load %arg6[%c8, %c0_39] : memref<9x64xf32, #tpu.memory_space<vmem>>, vector<1x64xf32>
    %91 = vector.shape_cast %90 : vector<1x64xf32> to vector<64xf32>
    %92 = vector.shape_cast %91 : vector<64xf32> to vector<1x1x64xf32>
    %93 = vector.broadcast %92 : vector<1x1x64xf32> to vector<8x8x64xf32>
    %94 = arith.mulf %89, %93 : vector<8x8x64xf32>
    %95 = arith.addf %88, %94 : vector<8x8x64xf32>
    %c0_40 = arith.constant 0 : index
    %c0_41 = arith.constant 0 : index
    %96 = vector.load %arg7[%c0_40, %c0_41] : memref<1x64xf32, #tpu.memory_space<vmem>>, vector<1x64xf32>
    %97 = vector.shape_cast %96 : vector<1x64xf32> to vector<64xf32>
    %98 = vector.shape_cast %97 : vector<64xf32> to vector<1x1x64xf32>
    %99 = vector.broadcast %98 : vector<1x1x64xf32> to vector<8x8x64xf32>
    %100 = arith.addf %95, %99 : vector<8x8x64xf32>
    %101 = arith.negf %100 : vector<8x8x64xf32>
    %102 = math.exp %101 : vector<8x8x64xf32>
    %cst_42 = arith.constant 1.000000e+00 : f32
    %103 = vector.broadcast %cst_42 : f32 to vector<8x8x64xf32>
    %104 = arith.addf %103, %102 : vector<8x8x64xf32>
    %105 = arith.divf %103, %104 : vector<8x8x64xf32>
    %106 = arith.mulf %100, %105 : vector<8x8x64xf32>
    %107 = vector.shape_cast %106 : vector<8x8x64xf32> to vector<64x64xf32>
    %cst_43 = arith.constant dense<0.000000e+00> : vector<64xf32>
    %108 = vector.multi_reduction <add>, %107, %cst_43 [0] : vector<64x64xf32> to vector<64xf32>
    %109 = vector.shape_cast %108 : vector<64xf32> to vector<1x64xf32>
    %cst_44 = arith.constant 6.400000e+01 : f32
    %110 = vector.broadcast %cst_44 : f32 to vector<1x64xf32>
    %111 = arith.divf %109, %110 : vector<1x64xf32>
    %112 = arith.truncf %111 : vector<1x64xf32> to vector<1x64xbf16>
    %c0_45 = arith.constant 0 : index
    %c0_46 = arith.constant 0 : index
    %113 = vector.load %arg8[%c0_45, %c0_46] : memref<64x4xbf16, #tpu.memory_space<vmem>>, vector<64x4xbf16>
    %cst_47 = arith.constant dense<0.000000e+00> : vector<1x4xf32>
    %114 = tpu.matmul %112, %113, %cst_47 {dimension_numbers = #tpu.dot_dimension_numbers<[1], [0], [0], [1], [0, 0, 1, 1], [], []>} : vector<1x64xbf16>, vector<64x4xbf16>, vector<1x4xf32> -> vector<1x4xf32>
    %c0_48 = arith.constant 0 : index
    %c0_49 = arith.constant 0 : index
    %115 = vector.load %arg9[%c0_48, %c0_49] : memref<1x4xf32, #tpu.memory_space<vmem>>, vector<1x4xf32>
    %116 = arith.addf %114, %115 : vector<1x4xf32>
    %117 = arith.negf %116 : vector<1x4xf32>
    %118 = math.exp %117 : vector<1x4xf32>
    %cst_50 = arith.constant 1.000000e+00 : f32
    %119 = vector.broadcast %cst_50 : f32 to vector<1x4xf32>
    %120 = arith.addf %119, %118 : vector<1x4xf32>
    %121 = arith.divf %119, %120 : vector<1x4xf32>
    %122 = arith.mulf %116, %121 : vector<1x4xf32>
    %123 = arith.truncf %122 : vector<1x4xf32> to vector<1x4xbf16>
    %c0_51 = arith.constant 0 : index
    %c0_52 = arith.constant 0 : index
    %124 = vector.load %arg10[%c0_51, %c0_52] : memref<4x64xbf16, #tpu.memory_space<vmem>>, vector<4x64xbf16>
    %cst_53 = arith.constant dense<0.000000e+00> : vector<1x64xf32>
    %125 = tpu.matmul %123, %124, %cst_53 {dimension_numbers = #tpu.dot_dimension_numbers<[1], [0], [0], [1], [0, 0, 1, 1], [], []>} : vector<1x4xbf16>, vector<4x64xbf16>, vector<1x64xf32> -> vector<1x64xf32>
    %c0_54 = arith.constant 0 : index
    %c0_55 = arith.constant 0 : index
    %126 = vector.load %arg11[%c0_54, %c0_55] : memref<1x64xf32, #tpu.memory_space<vmem>>, vector<1x64xf32>
    %127 = arith.addf %125, %126 : vector<1x64xf32>
    %128 = arith.negf %127 : vector<1x64xf32>
    %129 = math.exp %128 : vector<1x64xf32>
    %cst_56 = arith.constant 1.000000e+00 : f32
    %130 = vector.broadcast %cst_56 : f32 to vector<1x64xf32>
    %131 = arith.addf %130, %129 : vector<1x64xf32>
    %132 = arith.divf %130, %131 : vector<1x64xf32>
    %133 = vector.broadcast %132 : vector<1x64xf32> to vector<64x64xf32>
    %134 = arith.mulf %107, %133 : vector<64x64xf32>
    %135 = arith.truncf %134 : vector<64x64xf32> to vector<64x64xbf16>
    %c0_57 = arith.constant 0 : index
    %c0_58 = arith.constant 0 : index
    %136 = vector.load %arg12[%c0_57, %c0_58] : memref<64x24xbf16, #tpu.memory_space<vmem>>, vector<64x24xbf16>
    %cst_59 = arith.constant dense<0.000000e+00> : vector<64x24xf32>
    %137 = tpu.matmul %135, %136, %cst_59 {dimension_numbers = #tpu.dot_dimension_numbers<[1], [0], [0], [1], [0, 0, 1, 1], [], []>} : vector<64x64xbf16>, vector<64x24xbf16>, vector<64x24xf32> -> vector<64x24xf32>
    %c0_60 = arith.constant 0 : index
    %c0_61 = arith.constant 0 : index
    %138 = vector.load %arg13[%c0_60, %c0_61] : memref<1x24xf32, #tpu.memory_space<vmem>>, vector<1x24xf32>
    %139 = vector.broadcast %138 : vector<1x24xf32> to vector<64x24xf32>
    %140 = arith.addf %137, %139 : vector<64x24xf32>
    %141 = arith.truncf %140 : vector<64x24xf32> to vector<64x24xbf16>
    %c0_62 = arith.constant 0 : index
    %c0_63 = arith.constant 0 : index
    %142 = vector.load %arg14[%c0_62, %c0_63] : memref<24x64xbf16, #tpu.memory_space<vmem>>, vector<24x64xbf16>
    %cst_64 = arith.constant dense<0.000000e+00> : vector<64x64xf32>
    %143 = tpu.matmul %141, %142, %cst_64 {dimension_numbers = #tpu.dot_dimension_numbers<[1], [0], [0], [1], [0, 0, 1, 1], [], []>} : vector<64x24xbf16>, vector<24x64xbf16>, vector<64x64xf32> -> vector<64x64xf32>
    %c0_65 = arith.constant 0 : index
    %c0_66 = arith.constant 0 : index
    %144 = vector.load %arg15[%c0_65, %c0_66] : memref<1x64xf32, #tpu.memory_space<vmem>>, vector<1x64xf32>
    %145 = vector.broadcast %144 : vector<1x64xf32> to vector<64x64xf32>
    %146 = arith.addf %143, %145 : vector<64x64xf32>
    %147 = arith.negf %146 : vector<64x64xf32>
    %148 = math.exp %147 : vector<64x64xf32>
    %cst_67 = arith.constant 1.000000e+00 : f32
    %149 = vector.broadcast %cst_67 : f32 to vector<64x64xf32>
    %150 = arith.addf %149, %148 : vector<64x64xf32>
    %151 = arith.divf %149, %150 : vector<64x64xf32>
    %152 = arith.mulf %146, %151 : vector<64x64xf32>
    %cst_68 = arith.constant dense<0.000000e+00> : vector<64xf32>
    %153 = vector.multi_reduction <add>, %152, %cst_68 [0] : vector<64x64xf32> to vector<64xf32>
    %154 = vector.shape_cast %153 : vector<64xf32> to vector<1x64xf32>
    %cst_69 = arith.constant 6.400000e+01 : f32
    %155 = vector.broadcast %cst_69 : f32 to vector<1x64xf32>
    %156 = arith.divf %154, %155 : vector<1x64xf32>
    %157 = vector.shape_cast %156 : vector<1x64xf32> to vector<1x1x64xf32>
    %c0_70 = arith.constant 0 : index
    %c0_71 = arith.constant 0 : index
    %c0_72 = arith.constant 0 : index
    %158 = vector.load %arg16[%c0_70, %c0_71, %c0_72] : memref<1x1x64xf32, #tpu.memory_space<vmem>>, vector<1x1x64xf32>
    tpu.vector_store %arg16[%c0_70, %c0_71, %c0_72], %157 {strides = array<i32>} : memref<1x1x64xf32, #tpu.memory_space<vmem>>, vector<1x1x64xf32>,
    return
  }
  func.func @transform_0(%arg0: i32) -> (i32, i32, i32) {
    %c0_i32 = arith.constant 0 : i32
    %c0_i32_0 = arith.constant 0 : i32
    %c0_i32_1 = arith.constant 0 : i32
    return %arg0, %c0_i32, %c0_i32_0 : i32, i32, i32
  }
  func.func @transform_1(%arg0: i32) -> (i32, i32) {
    %c0_i32 = arith.constant 0 : i32
    %c0_i32_0 = arith.constant 0 : i32
    %c0_i32_1 = arith.constant 0 : i32
    return %c0_i32, %c0_i32_0 : i32, i32
  }
  func.func @transform_2(%arg0: i32) -> (i32, i32) {
    %c0_i32 = arith.constant 0 : i32
    %c0_i32_0 = arith.constant 0 : i32
    %c0_i32_1 = arith.constant 0 : i32
    return %c0_i32, %c0_i32_0 : i32, i32
  }
  func.func @transform_3(%arg0: i32) -> (i32, i32) {
    %c0_i32 = arith.constant 0 : i32
    %c0_i32_0 = arith.constant 0 : i32
    %c0_i32_1 = arith.constant 0 : i32
    return %c0_i32, %c0_i32_0 : i32, i32
  }
  func.func @transform_4(%arg0: i32) -> (i32, i32) {
    %c0_i32 = arith.constant 0 : i32
    %c0_i32_0 = arith.constant 0 : i32
    %c0_i32_1 = arith.constant 0 : i32
    return %c0_i32, %c0_i32_0 : i32, i32
  }
  func.func @transform_5(%arg0: i32) -> (i32, i32) {
    %c0_i32 = arith.constant 0 : i32
    %c0_i32_0 = arith.constant 0 : i32
    %c0_i32_1 = arith.constant 0 : i32
    return %c0_i32, %c0_i32_0 : i32, i32
  }
  func.func @transform_6(%arg0: i32) -> (i32, i32) {
    %c0_i32 = arith.constant 0 : i32
    %c0_i32_0 = arith.constant 0 : i32
    %c0_i32_1 = arith.constant 0 : i32
    return %c0_i32, %c0_i32_0 : i32, i32
  }
  func.func @transform_7(%arg0: i32) -> (i32, i32) {
    %c0_i32 = arith.constant 0 : i32
    %c0_i32_0 = arith.constant 0 : i32
    %c0_i32_1 = arith.constant 0 : i32
    return %c0_i32, %c0_i32_0 : i32, i32
  }
  func.func @transform_8(%arg0: i32) -> (i32, i32) {
    %c0_i32 = arith.constant 0 : i32
    %c0_i32_0 = arith.constant 0 : i32
    %c0_i32_1 = arith.constant 0 : i32
    return %c0_i32, %c0_i32_0 : i32, i32
  }
  func.func @transform_9(%arg0: i32) -> (i32, i32) {
    %c0_i32 = arith.constant 0 : i32
    %c0_i32_0 = arith.constant 0 : i32
    %c0_i32_1 = arith.constant 0 : i32
    return %c0_i32, %c0_i32_0 : i32, i32
  }
  func.func @transform_10(%arg0: i32) -> (i32, i32) {
    %c0_i32 = arith.constant 0 : i32
    %c0_i32_0 = arith.constant 0 : i32
    %c0_i32_1 = arith.constant 0 : i32
    return %c0_i32, %c0_i32_0 : i32, i32
  }
  func.func @transform_11(%arg0: i32) -> (i32, i32) {
    %c0_i32 = arith.constant 0 : i32
    %c0_i32_0 = arith.constant 0 : i32
    %c0_i32_1 = arith.constant 0 : i32
    return %c0_i32, %c0_i32_0 : i32, i32
  }
  func.func @transform_12(%arg0: i32) -> (i32, i32) {
    %c0_i32 = arith.constant 0 : i32
    %c0_i32_0 = arith.constant 0 : i32
    %c0_i32_1 = arith.constant 0 : i32
    return %c0_i32, %c0_i32_0 : i32, i32
  }
  func.func @transform_13(%arg0: i32) -> (i32, i32) {
    %c0_i32 = arith.constant 0 : i32
    %c0_i32_0 = arith.constant 0 : i32
    %c0_i32_1 = arith.constant 0 : i32
    return %c0_i32, %c0_i32_0 : i32, i32
  }
  func.func @transform_14(%arg0: i32) -> (i32, i32) {
    %c0_i32 = arith.constant 0 : i32
    %c0_i32_0 = arith.constant 0 : i32
    %c0_i32_1 = arith.constant 0 : i32
    return %c0_i32, %c0_i32_0 : i32, i32
  }
  func.func @transform_15(%arg0: i32) -> (i32, i32, i32) {
    %c0_i32 = arith.constant 0 : i32
    %c0_i32_0 = arith.constant 0 : i32
    %c0_i32_1 = arith.constant 0 : i32
    return %arg0, %c0_i32, %c0_i32_0 : i32, i32, i32
  }
}

</mosaic_0001>

<bundles_post_ra>
// kernel: backbone_forward.1
= control target key start
LH: loop header
LB: loop body
LE: loop exit
PB: predicated region body
PF: predicated region fallthrough
CT: control target
= control target key end

     0   :  { %s3299_s0 = inlined_call_operand.vmem [shape: bf16[2,64,27], index: 0, kind: input, shape index: {}]   ;;  %s3300_s1 = inlined_call_operand.vmem [shape: bf16[27,16], index: 1, kind: input, shape index: {}]   ;;  %s3301_s2 = inlined_call_operand.vmem [shape: f32[1,16], index: 2, kind: input, shape index: {}]   ;;  %s3302_s3 = inlined_call_operand.vmem [shape: bf16[16,64], index: 3, kind: input, shape index: {}]   ;;  %s3303_s4 = inlined_call_operand.vmem [shape: f32[1,64], index: 4, kind: input, shape index: {}]   ;;  %s3304_s5 = inlined_call_operand.vmem [shape: f32[9,64], index: 5, kind: input, shape index: {}]   ;;  %s3305_s6 = inlined_call_operand.vmem [shape: f32[1,64], index: 6, kind: input, shape index: {}]   ;;  %s3306_s7 = inlined_call_operand.vmem [shape: bf16[64,4], index: 7, kind: input, shape index: {}]   ;;  %s3307_s8 = inlined_call_operand.vmem [shape: f32[1,4], index: 8, kind: input, shape index: {}]   ;;  %s3308_s9 = inlined_call_operand.vmem [shape: bf16[4,64], index: 9, kind: input, shape index: {}]   ;;  %s3309_s10 = inlined_call_operand.vmem [shape: f32[1,64], index: 10, kind: input, shape index: {}]   ;;  %s3310_s11 = inlined_call_operand.vmem [shape: bf16[64,24], index: 11, kind: input, shape index: {}]   ;;  %s3311_s12 = inlined_call_operand.vmem [shape: f32[1,24], index: 12, kind: input, shape index: {}]   ;;  %s3312_s13 = inlined_call_operand.vmem [shape: bf16[24,64], index: 13, kind: input, shape index: {}]   ;;  %s3313_s14 = inlined_call_operand.vmem [shape: f32[1,64], index: 14, kind: input, shape index: {}]   ;;  %s3314_s15 = inlined_call_operand.hbm [shape: f32[2,1,64], index: 15, kind: output, shape index: {}]  }
   0x1   :  { %3318 = sst [smem:[#allocation9_spill]] %s3299_s0 }
   0x2   :  { %3319 = sst [smem:[#allocation10_spill]] %s3300_s1 }
   0x3   :  { %20 = vsyncpa [#allocation4], 0 }
   0x4   :  { %22 = vsyncpa [#allocation4 + $0x1], 0  ;;  %s2394_s18 = smov 0   ;;  %s2396_s19 = smov 0  }
   0x5   :  { %s2398_s20 = smov 0   ;;  %s2400_s21 = smov 0  }
   0x6 LB: > { %3320 = sst [smem:[#allocation6_spill]] %s2305_s20  ;;  %s2415_s22 = sadd.s32 4294967295, %s2309_s21   ;;  %s2309_s21 = sphi %s2400_s21, %s3365_s21   ;;  %s2305_s20 = sphi %s2398_s20, %s3367_s20   ;;  %s2301_s19 = sphi %s2396_s19, %s3369_s19   ;;  %s2297_s18 = sphi %s2394_s18, %s3368_s18  }
   0x7   : > { %s1912_s23 = sadd.s32 4294967294, %s2309_s21   ;;  %s2419_s24 = sadd.s32 1, %s2309_s21  }
   0x8   : > { %3321 = sst [smem:[#allocation7_spill]] %s2419_s24  ;;  %s355_s25 = sadd.s32 1, %s2305_s20 }
   0x9   : > { %s352_s26 = ssub.s32 %s2309_s21, %s2419_s24  ;;  %p365_p0 = scmp.ne.s32.totalorder %s2305_s20, %s2301_s19 }
   0xa   : > { %p353_p1 = scmp.eq.s32.totalorder %s352_s26, 0  ;;  %p366_p2 = scmp.eq.s32.totalorder %s2415_s22, 1 }
   0xb   : > { %p371_p3 = scmp.ne.s32.totalorder %s2301_s19, %s2297_s18  ;;  %p372_p4 = scmp.eq.s32.totalorder %s1912_s23, 1 }
   0xc   : > { %s2430_s27 = scalar_select %p353_p1, %s2305_s20, %s355_s25  }
   0xd   : > { %p2432_p5 = por %p366_p2, %p365_p0  ;;  %p2436_p6 = por %p372_p4, %p371_p3 }
   0xe   : > { %3322 = sst [smem:[#allocation8_spill]] %s2430_s27  ;;  %p1915_p7 = scmp.ge.s32.totalorder %s2309_s21, 1 }
   0xf   : > { %p440_p8 = scmp.lt.s32.totalorder %s2309_s21, 3 }
  0x11   : > { %p441_p9 = pnand %p1915_p7, %p440_p8 }
  0x12   : > { %s3325_s1 = sld [smem:[#allocation10_spill]] (!%p441_p9)  ;;  %p487_p10 = scmp.lt.s32.totalorder (!%p441_p9), %s2415_s22, 1 }
  0x13   : > { %444 = sbr.rel (%p441_p9) target bundleno = 1208 (0x4b8), region = 80  ;;  %s3326_s0 = sld [smem:[#allocation9_spill]] (!%p441_p9) }
  0x14   : > { %s485_s20 = sand.u32 (!%p441_p9), 1, %s2301_s19   ;;  %s2267_s24 = scalar_lea.hbm (!%p441_p9), %s3314_s15, 2 }
  0x15   : > { %s486_s26 = scalar_lea.vmem (!%p441_p9), [#allocation3], %s485_s20 }
  0x18   : > { %v1940_v0 = vld [vmem:[%s3325_s1 + $0x8] sm:$0xf]  ;;  %v2042_v1 = vld [vmem:[%s3325_s1 + $0x8] sm:$0x30]  ;;  %vm553_vm0 = vcmask 1044480   ;;  %vm554_vm1 = vcmask 1045504  }
  0x19   : > { %v1941_v2 = vor.u32 %v2042_v1, %v1940_v0  ;;  %v2311_v3 = vmov 65535   ;;  %s488_s25 = scalar_select %p487_p10, %s2415_s22, 1  ;;  %v2041_v7 = vld [vmem:[%s3325_s1] sm:$0xff]  ;;  %vm540_vm2 = vcmask 220160   ;;  %vm765_vm11 = vcmask 130048  }
  0x1a   : > { %v555_v4 = vsel %vm553_vm0, 4294967295, %v2311_v3  ;;  %v2459_v12 = vld [vmem:[%s3301_s2] ss:$0 sm:$0xff] }
  0x1b   : > { %v556_v5 = vsel %vm554_vm1, %v555_v4, 0  ;;  %s2036_s30 = sshll.u32 %s488_s25, 5  ;;  %v2043_v16 = vld [vmem:[%s3302_s3] sm:$0xff]  ;;  %s1853_s25 = scalar_lea.hbm %s3314_s15, %s2415_s22 }
  0x1c   : > { %v558_v6 = vand.u32 %v1941_v2, %v556_v5  ;;  %s491_s17 = scalar_lea.vmem %s3326_s0, %s2036_s30  ;;  %785 = vmatpush.bf16.msra.mxu1 %v2043_v16  ;;  %s1855_s30 = sshll.u32 %s486_s26, 4  ;;  %s1856_s30 = int_to_ptr.vmem [resolvable:$true] %s1855_s30 }
  0x1d   : > { %v2037_v8 = vld [vmem:[%s491_s17] sm:$0xff]  ;;  %v2038_v9 = vld [vmem:[%s491_s17 + $0x8] sm:$0xff]  ;;  %v2039_v10 = vld [vmem:[%s491_s17 + $0x10] sm:$0xff]  ;;  %s1857_s16 = sshll.u32 %s1853_s25, 4  ;;  %s1858_s16 = int_to_ptr.hbm [resolvable:$true] %s1857_s16 }
  0x1e   : > { %566 = vmatpush.bf16.msra.mxu0 %v558_v6  ;;  %v2040_v11 = vld [vmem:[%s491_s17 + $0x18] sm:$0xff]  ;;  %s1845_s17 = scalar_lea.sflag [#allocation4], %s485_s20  ;;  %s2261_s23 = sshra.s32 %s1858_s16, 4  ;;  %s2262_s23 = int_to_ptr.hbm [resolvable:$true] %s2261_s23 }
  0x1f   : > { %s2263_s0 = scalar_lea.hbm %s2262_s23, 1  ;;  %p2268_p0 = scmp.lt.s32.totalorder %s2262_s23, %s3314_s15 }
  0x20   : > { %p2264_p11 = scmp.ne.s32.totalorder %s2262_s23, %s2263_s0  ;;  %p2269_p1 = scmp.lt.s32.totalorder %s2267_s24, %s2263_s0 }
  0x22   : > { %567 = vmatpush.bf16.msra.mxu0 %v2041_v7  ;;  %p2265_p12 = pnand %p2264_p11, %p2432_p5  ;;  %p2270_p2 = por %p2269_p1, %p2268_p0 }
  0x24   : > { %p2266_p13 = pneg %p2265_p12 }
  0x25   : > { %1942 = vmatmul.msk.bf16.vlgmr.msra.gmra.mxu0 %vm540_vm2, %v2037_v8 }
  0x26   : > { %p2271_p3 = pnand %p2270_p2, %p2266_p13 }
  0x35   : > { %1943 = vmatmul.msk.bf16.gmra.mxu0 %vm540_vm2, %v2038_v9 }
  0x45   : > { %1944 = vmatmul.msk.bf16.gmra.mxu0 %vm540_vm2, %v2039_v10 }
  0x55   : > { %1945 = vmatmul.msk.bf16.gmra.mxu0 %vm540_vm2, %v2040_v11 }
  0xa2   : > { %v569_v13 = vpop.f32.mrf.mxu0 }
  0xa3   : > { %v2462_v14 = vadd.f32 %v2459_v12, %v569_v13 }
  0xa5   : > { %v1946_v15 = vmul.f32 -1.442695, %v2462_v14 }
  0xa7   : > { %2109 = vpow2.f32 %v1946_v15 }
  0xaa   : > { %v571_v17 = vpop.f32.mrf.mxu0 }
  0xab   : > { %v572_v18 = vadd.f32 %v2459_v12, %v571_v17 }
  0xad   : > { %v2110_v19 = vpop.eup %2109  ;;  %v1947_v20 = vmul.f32 -1.442695, %v572_v18 }
  0xae   : > { %v613_v21 = vadd.f32 1.0, %v2110_v19 }
  0xaf   : > { %2111 = vpow2.f32 %v1947_v20 }
  0xb0   : > { %2113 = vrcp.f32 %v613_v21  ;;  %v632_v39 = vand.u32 2147483648, %v613_v21  ;;  %vm626_vm4 = vweird.f32 %v613_v21  ;;  %v630_v40 = vand.u32 2147483647, %v613_v21 }
  0xb2   : > { %v574_v22 = vpop.f32.mrf.mxu0  ;;  %v633_v49 = vor.u32 1.1754944e-38, %v632_v39  ;;  %vm631_vm7 = vcmp.eq.f32.partialorder %v630_v40, 8.507059e+37 }
  0xb3   : > { %v2470_v23 = vadd.f32 %v2459_v12, %v574_v22 }
  0xb5   : > { %v2112_v24 = vpop.eup %2111  ;;  %v1948_v25 = vmul.f32 -1.442695, %v2470_v23 }
  0xb6   : > { %v2114_v26 = vpop.eup %2113  ;;  %v614_v27 = vadd.f32 1.0, %v2112_v24 }
  0xb7   : > { %v622_v28 = vmul.f32 %v2114_v26, %v613_v21  ;;  %2115 = vpow2.f32 %v1948_v25  ;;  %vm627_vm3 = vweird.f32 %v2114_v26 }
  0xb8   : > { %2117 = vrcp.f32 %v614_v27  ;;  %vm2480_vm5 = vmor %vm626_vm4, %vm627_vm3  ;;  %v645_v43 = vand.u32 2147483647, %v614_v27  ;;  %v647_v44 = vand.u32 2147483648, %v614_v27  ;;  %vm641_vm8 = vweird.f32 %v614_v27 }
  0xb9   : > { %v623_v29 = vsub.f32 1.0, %v622_v28 }
  0xba   : > { %v576_v30 = vpop.f32.mrf.mxu0  ;;  %v648_v55 = vor.u32 1.1754944e-38, %v647_v44  ;;  %vm646_vm10 = vcmp.eq.f32.partialorder %v645_v43, 8.507059e+37 }
  0xbb   : > { %v624_v31 = vmul.f32 %v2114_v26, %v623_v29  ;;  %v2474_v32 = vadd.f32 %v2459_v12, %v576_v30 }
  0xbd   : > { %v2116_v33 = vpop.eup %2115  ;;  %v1949_v34 = vmul.f32 -1.442695, %v2474_v32  ;;  %v625_v37 = vadd.f32 %v2114_v26, %v624_v31 }
  0xbe   : > { %v2118_v35 = vpop.eup %2117  ;;  %v2477_v36 = vadd.f32 1.0, %v2116_v33 }
  0xbf   : > { %v637_v38 = vmul.f32 %v2118_v35, %v614_v27  ;;  %2119 = vpow2.f32 %v1949_v34  ;;  %v629_v46 = vsel %vm2480_vm5, %v2114_v26, %v625_v37  ;;  %vm642_vm6 = vweird.f32 %v2118_v35 }
  0xc0   : > { %2121 = vrcp.f32 %v2477_v36  ;;  %v634_v54 = vsel %vm631_vm7, %v633_v49, %v629_v46  ;;  %vm643_vm9 = vmor %vm641_vm8, %vm642_vm6  ;;  %v662_v9 = vand.u32 2147483648, %v2477_v36  ;;  %vm656_vm13 = vweird.f32 %v2477_v36 }
  0xc1   : > { %v638_v41 = vsub.f32 1.0, %v637_v38  ;;  %v741_v60 = vmul.f32 %v634_v54, %v2462_v14  ;;  %v660_v10 = vand.u32 2147483647, %v2477_v36 }
  0xc2   : > { %v579_v45 = vpop.f32.mrf.mxu0  ;;  %v663_v20 = vor.u32 1.1754944e-38, %v662_v9 }
  0xc3   : > { %v639_v47 = vmul.f32 %v2118_v35, %v638_v41  ;;  %v2487_v48 = vadd.f32 %v2459_v12, %v579_v45  ;;  %vm661_vm0 = vcmp.eq.f32.partialorder %v660_v10, 8.507059e+37 }
  0xc5   : > { %v2120_v50 = vpop.eup %2119  ;;  %v640_v51 = vadd.f32 %v2118_v35, %v639_v47  ;;  %v1950_v52 = vmul.f32 -1.442695, %v2487_v48 }
  0xc6   : > { %v2122_v53 = vpop.eup %2121  ;;  %v616_v56 = vadd.f32 1.0, %v2120_v50 }
  0xc7   : > { %v644_v57 = vsel %vm643_vm9, %v2118_v35, %v640_v51  ;;  %v652_v58 = vmul.f32 %v2122_v53, %v2477_v36  ;;  %2123 = vpow2.f32 %v1950_v52  ;;  %vm657_vm12 = vweird.f32 %v2122_v53 }
  0xc8   : > { %v649_v59 = vsel %vm646_vm10, %v648_v55, %v644_v57  ;;  %2125 = vrcp.f32 %v616_v56  ;;  %vm2503_vm14 = vmor %vm656_vm13, %vm657_vm12  ;;  %v675_v14 = vand.u32 2147483647, %v616_v56  ;;  %v677_v15 = vand.u32 2147483648, %v616_v56 }
  0xc9   : > { %v742_v61 = vmul.f32 %v649_v59, %v572_v18  ;;  %v653_v62 = vsub.f32 1.0, %v652_v58  ;;  %vm671_vm1 = vweird.f32 %v616_v56 }
  0xca   : > { %v581_v63 = vpop.f32.mrf.mxu0  ;;  %v678_v27 = vor.u32 1.1754944e-38, %v677_v15  ;;  %vm676_vm3 = vcmp.eq.f32.partialorder %v675_v14, 8.507059e+37 }
  0xcb   : > { %v654_v0 = vmul.f32 %v2122_v53, %v653_v62  ;;  %v2493_v1 = vadd.f32 %v2459_v12, %v581_v63  ;;  %v749_v2 = vpack.c.bf16 %v742_v61, %v741_v60 }
  0xcd   : > { %v2124_v3 = vpop.eup %2123  ;;  %v1951_v4 = vmul.f32 -1.442695, %v2493_v1  ;;  %1958 = vmatmul.msk.bf16.vlgmr.msra.gmra.mxu1 %vm765_vm11, %v749_v2  ;;  %v655_v7 = vadd.f32 %v2122_v53, %v654_v0 }
  0xce   : > { %v2126_v5 = vpop.eup %2125  ;;  %v2497_v6 = vadd.f32 1.0, %v2124_v3 }
  0xcf   : > { %v667_v8 = vmul.f32 %v2126_v5, %v616_v56  ;;  %2127 = vpow2.f32 %v1951_v4  ;;  %v659_v17 = vsel %vm2503_vm14, %v2122_v53, %v655_v7  ;;  %vm672_vm15 = vweird.f32 %v2126_v5 }
  0xd0   : > { %2129 = vrcp.f32 %v2497_v6  ;;  %v664_v26 = vsel %vm661_vm0, %v663_v20, %v659_v17  ;;  %vm673_vm2 = vmor %vm671_vm1, %vm672_vm15  ;;  %vm686_vm5 = vweird.f32 %v2497_v6 }
  0xd1   : > { %v668_v11 = vsub.f32 1.0, %v667_v8  ;;  %v743_v33 = vmul.f32 %v664_v26, %v2470_v23  ;;  %v692_v23 = vand.u32 2147483648, %v2497_v6 }
  0xd2   : > { %v584_v16 = vpop.f32.mrf.mxu0 }
  0xd3   : > { %v669_v18 = vmul.f32 %v2126_v5, %v668_v11  ;;  %v2510_v19 = vadd.f32 %v2459_v12, %v584_v16  ;;  %v693_v51 = vor.u32 1.1754944e-38, %v692_v23 }
  0xd5   : > { %v2128_v21 = vpop.eup %2127  ;;  %v670_v22 = vadd.f32 %v2126_v5, %v669_v18  ;;  %v1952_v24 = vmul.f32 -1.442695, %v2510_v19 }
  0xd6   : > { %v2130_v25 = vpop.eup %2129  ;;  %v618_v28 = vadd.f32 1.0, %v2128_v21 }
  0xd7   : > { %v674_v29 = vsel %vm673_vm2, %v2126_v5, %v670_v22  ;;  %v682_v30 = vmul.f32 %v2130_v25, %v2497_v6  ;;  %2131 = vpow2.f32 %v1952_v24  ;;  %vm687_vm4 = vweird.f32 %v2130_v25  ;;  %v2533_v22 = vld [vmem:[%s3303_s4] ss:$0 sm:$0xff] }
  0xd8   : > { %v679_v31 = vsel %vm676_vm3, %v678_v27, %v674_v29  ;;  %2133 = vrcp.f32 %v618_v28  ;;  %vm688_vm6 = vmor %vm686_vm5, %vm687_vm4  ;;  %v707_v46 = vand.u32 2147483648, %v618_v28  ;;  %v705_v50 = vand.u32 2147483647, %v618_v28 }
  0xd9   : > { %v744_v34 = vmul.f32 %v679_v31, %v2474_v32  ;;  %v683_v35 = vsub.f32 1.0, %v682_v30  ;;  %vm701_vm9 = vweird.f32 %v618_v28  ;;  %vm967_vm5 = vcmask 523264  }
  0xda   : > { %v586_v36 = vpop.f32.mrf.mxu0  ;;  %v708_v56 = vor.u32 1.1754944e-38, %v707_v46  ;;  %vm706_vm12 = vcmp.eq.f32.partialorder %v705_v50, 8.507059e+37 }
  0xdb   : > { %v684_v37 = vmul.f32 %v2130_v25, %v683_v35  ;;  %v2517_v38 = vadd.f32 %v2459_v12, %v586_v36  ;;  %v750_v39 = vpack.c.bf16 %v744_v34, %v743_v33  ;;  %v690_v12 = vand.u32 2147483647, %v2497_v6 }
  0xdd   : > { %v2132_v40 = vpop.eup %2131  ;;  %v1953_v41 = vmul.f32 -1.442695, %v2517_v38  ;;  %1959 = vmatmul.msk.bf16.gmra.mxu1 %vm765_vm11, %v750_v39  ;;  %v685_v44 = vadd.f32 %v2130_v25, %v684_v37  ;;  %vm691_vm8 = vcmp.eq.f32.partialorder %v690_v12, 8.507059e+37 }
  0xde   : > { %v2134_v42 = vpop.eup %2133  ;;  %v619_v43 = vadd.f32 1.0, %v2132_v40 }
  0xdf   : > { %v697_v45 = vmul.f32 %v2134_v42, %v618_v28  ;;  %2135 = vpow2.f32 %v1953_v41  ;;  %v689_v47 = vsel %vm688_vm6, %v2130_v25, %v685_v44  ;;  %vm702_vm7 = vweird.f32 %v2134_v42 }
  0xe0   : > { %2137 = vrcp.f32 %v619_v43  ;;  %v694_v55 = vsel %vm691_vm8, %v693_v51, %v689_v47  ;;  %vm703_vm10 = vmor %vm701_vm9, %vm702_vm7  ;;  %v722_v6 = vand.u32 2147483648, %v619_v43  ;;  %vm716_vm14 = vweird.f32 %v619_v43 }
  0xe1   : > { %v698_v32 = vsub.f32 1.0, %v697_v45  ;;  %v745_v61 = vmul.f32 %v694_v55, %v2487_v48  ;;  %v720_v7 = vand.u32 2147483647, %v619_v43  ;;  %v2312_v25 = vmov 0.0  }
  0xe2   : > { %968 = vst.msk [vmem:[#allocation2] sm:$0xff] %vm967_vm5, %v2312_v25  ;;  %vm969_vm6 = vcmask 517120  }
  0xe3   : > { %v699_v49 = vmul.f32 %v2134_v42, %v698_v32  ;;  %vm721_vm1 = vcmp.eq.f32.partialorder %v720_v7, 8.507059e+37  ;;  %970 = vst.msk [vmem:[#allocation2 + $0x8] sm:$0x3] %vm969_vm6, %v2312_v25 }
  0xe4   : > { %971 = vst.msk [vmem:[#allocation2 + $0x10] sm:$0xff] %vm967_vm5, %v2312_v25 }
  0xe5   : > { %v2136_v52 = vpop.eup %2135  ;;  %v700_v53 = vadd.f32 %v2134_v42, %v699_v49  ;;  %972 = vst.msk [vmem:[#allocation2 + $0x18] sm:$0x3] %vm969_vm6, %v2312_v25 }
  0xe6   : > { %v2138_v54 = vpop.eup %2137  ;;  %v620_v57 = vadd.f32 1.0, %v2136_v52  ;;  %973 = vst.msk [vmem:[#allocation2 + $0x20] sm:$0xff] %vm967_vm5, %v2312_v25 }
  0xe7   : > { %v704_v58 = vsel %vm703_vm10, %v2134_v42, %v700_v53  ;;  %v712_v59 = vmul.f32 %v2138_v54, %v619_v43  ;;  %vm717_vm13 = vweird.f32 %v2138_v54  ;;  %974 = vst.msk [vmem:[#allocation2 + $0x28] sm:$0x3] %vm969_vm6, %v2312_v25 }
  0xe8   : > { %v709_v60 = vsel %vm706_vm12, %v708_v56, %v704_v58  ;;  %2139 = vrcp.f32 %v620_v57  ;;  %vm718_vm15 = vmor %vm716_vm14, %vm717_vm13  ;;  %v737_v9 = vand.u32 2147483648, %v620_v57  ;;  %v735_v48 = vand.u32 2147483647, %v620_v57  ;;  %975 = vst.msk [vmem:[#allocation2 + $0x30] sm:$0xff] %vm967_vm5, %v2312_v25 }
  0xe9   : > { %v746_v62 = vmul.f32 %v709_v60, %v2493_v1  ;;  %v713_v63 = vsub.f32 1.0, %v712_v59  ;;  %v723_v1 = vor.u32 1.1754944e-38, %v722_v6  ;;  %vm731_vm2 = vweird.f32 %v620_v57  ;;  %976 = vst.msk [vmem:[#allocation2 + $0x38] sm:$0x3] %vm969_vm6, %v2312_v25 }
  0xea   : > { %v738_v15 = vor.u32 1.1754944e-38, %v737_v9  ;;  %vm736_vm4 = vcmp.eq.f32.partialorder %v735_v48, 8.507059e+37  ;;  %977 = vst.msk [vmem:[#allocation2 + $0x40] sm:$0xff] %vm967_vm5, %v2312_v25 }
  0xeb   : > { %v714_v0 = vmul.f32 %v2138_v54, %v713_v63  ;;  %v751_v2 = vpack.c.bf16 %v746_v62, %v745_v61  ;;  %978 = vst.msk [vmem:[#allocation2 + $0x48] sm:$0x3] %vm969_vm6, %v2312_v25 }
  0xec   : > { %979 = vst.msk [vmem:[#allocation2 + $0x50] sm:$0xff] %vm967_vm5, %v2312_v25 }
  0xed   : > { %1960 = vmatmul.msk.bf16.gmra.mxu1 %vm765_vm11, %v751_v2  ;;  %v715_v4 = vadd.f32 %v2138_v54, %v714_v0  ;;  %980 = vst.msk [vmem:[#allocation2 + $0x58] sm:$0x3] %vm969_vm6, %v2312_v25 }
  0xee   : > { %v2140_v3 = vpop.eup %2139  ;;  %981 = vst.msk [vmem:[#allocation2 + $0x60] sm:$0xff] %vm967_vm5, %v2312_v25 }
  0xef   : > { %v727_v5 = vmul.f32 %v2140_v3, %v620_v57  ;;  %v719_v10 = vsel %vm718_vm15, %v2138_v54, %v715_v4  ;;  %vm732_vm0 = vweird.f32 %v2140_v3  ;;  %982 = vst.msk [vmem:[#allocation2 + $0x68] sm:$0x3] %vm969_vm6, %v2312_v25 }
  0xf0   : > { %v724_v14 = vsel %vm721_vm1, %v723_v1, %v719_v10  ;;  %vm733_vm3 = vmor %vm731_vm2, %vm732_vm0  ;;  %983 = vst.msk [vmem:[#allocation2 + $0x70] sm:$0xff] %vm967_vm5, %v2312_v25 }
  0xf1   : > { %v728_v8 = vsub.f32 1.0, %v727_v5  ;;  %v747_v18 = vmul.f32 %v724_v14, %v2510_v19  ;;  %984 = vst.msk [vmem:[#allocation2 + $0x78] sm:$0x3] %vm969_vm6, %v2312_v25 }
  0xf2   : > { %985 = vst.msk [vmem:[#allocation2 + $0x80] sm:$0xff] %vm967_vm5, %v2312_v25 }
  0xf3   : > { %v729_v11 = vmul.f32 %v2140_v3, %v728_v8  ;;  %986 = vst.msk [vmem:[#allocation2 + $0x88] sm:$0x3] %vm969_vm6, %v2312_v25 }
  0xf4   : > { %987 = vst.msk [vmem:[#allocation2 + $0x90] sm:$0xff] %vm967_vm5, %v2312_v25 }
  0xf5   : > { %v730_v13 = vadd.f32 %v2140_v3, %v729_v11  ;;  %988 = vst.msk [vmem:[#allocation2 + $0x98] sm:$0x3] %vm969_vm6, %v2312_v25 }
  0xf7   : > { %v734_v16 = vsel %vm733_vm3, %v2140_v3, %v730_v13 }
  0xf8   : > { %v739_v17 = vsel %vm736_vm4, %v738_v15, %v734_v16 }
  0xf9   : > { %v748_v20 = vmul.f32 %v739_v17, %v2517_v38  ;;  %v2584_v17 = vld [vmem:[%s3304_s5] ss:$0 sm:$0xff] }
  0xfb   : > { %v752_v21 = vpack.c.bf16 %v748_v20, %v747_v18  ;;  %v2589_v18 = vld [vmem:[%s3304_s5 + $0x3] ss:$0 sm:$0xff] }
  0xfd   : > { %1961 = vmatmul.msk.bf16.gmra.mxu1 %vm765_vm11, %v752_v21 }
 0x14a   : > { %v787_v24 = vpop.f32.mrf.mxu1 }
 0x14b   : > { %v788_v26 = vadd.f32 %v2533_v22, %v787_v24  ;;  %v998_v24 = vld [vmem:[#allocation2] sm:$0xff] }
 0x14d   : > { %v1962_v19 = vmul.f32 -1.442695, %v788_v26 }
 0x14f   : > { %2141 = vpow2.f32 %v1962_v19  ;;  %v2595_v19 = vld [vmem:[%s3304_s5 + $0x6] ss:$0 sm:$0xff] }
 0x152   : > { %v789_v27 = vpop.f32.mrf.mxu1 }
 0x153   : > { %v2546_v28 = vadd.f32 %v2533_v22, %v789_v27 }
 0x155   : > { %v2142_v29 = vpop.eup %2141  ;;  %v1963_v30 = vmul.f32 -1.442695, %v2546_v28 }
 0x156   : > { %v831_v31 = vadd.f32 1.0, %v2142_v29 }
 0x157   : > { %2143 = vpow2.f32 %v1963_v30 }
 0x158   : > { %2145 = vrcp.f32 %v831_v31  ;;  %v850_v41 = vand.u32 2147483648, %v831_v31  ;;  %v848_v44 = vand.u32 2147483647, %v831_v31  ;;  %vm844_vm7 = vweird.f32 %v831_v31 }
 0x15a   : > { %v792_v33 = vpop.f32.mrf.mxu1  ;;  %v851_v47 = vor.u32 1.1754944e-38, %v850_v41  ;;  %vm849_vm9 = vcmp.eq.f32.partialorder %v848_v44, 8.507059e+37 }
 0x15b   : > { %v2558_v34 = vadd.f32 %v2533_v22, %v792_v33  ;;  %v1062_v33 = vld [vmem:[#allocation2 + $0x1] sm:$0xff] }
 0x15d   : > { %v2144_v35 = vpop.eup %2143  ;;  %v1964_v36 = vmul.f32 -1.442695, %v2558_v34 }
 0x15e   : > { %v2146_v37 = vpop.eup %2145  ;;  %v832_v38 = vadd.f32 1.0, %v2144_v35  ;;  %v1010_v35 = vmul.f32 %v2584_v17, %v998_v24 }
 0x15f   : > { %v840_v39 = vmul.f32 %v2146_v37, %v831_v31  ;;  %2147 = vpow2.f32 %v1964_v36  ;;  %vm845_vm11 = vweird.f32 %v2146_v37 }
 0x160   : > { %2149 = vrcp.f32 %v832_v38  ;;  %vm846_vm8 = vmor %vm844_vm7, %vm845_vm11  ;;  %v865_v55 = vand.u32 2147483648, %v832_v38  ;;  %v863_v58 = vand.u32 2147483647, %v832_v38  ;;  %vm859_vm12 = vweird.f32 %v832_v38 }
 0x161   : > { %v841_v40 = vsub.f32 1.0, %v840_v39 }
 0x162   : > { %v794_v42 = vpop.f32.mrf.mxu1  ;;  %v866_v0 = vor.u32 1.1754944e-38, %v865_v55  ;;  %vm864_vm14 = vcmp.eq.f32.partialorder %v863_v58, 8.507059e+37 }
 0x163   : > { %v842_v43 = vmul.f32 %v2146_v37, %v841_v40  ;;  %v2565_v45 = vadd.f32 %v2533_v22, %v794_v42  ;;  %v1126_v40 = vld [vmem:[#allocation2 + $0x2] sm:$0xff] }
 0x164   : > { %v2614_v42 = vld [vmem:[%s3304_s5 + $0x2] ss:$0 sm:$0xff] }
 0x165   : > { %v2148_v23 = vpop.eup %2147  ;;  %v843_v12 = vadd.f32 %v2146_v37, %v842_v43  ;;  %v1965_v32 = vmul.f32 -1.442695, %v2565_v45 }
 0x166   : > { %v2150_v46 = vpop.eup %2149  ;;  %v833_v49 = vadd.f32 1.0, %v2148_v23 }
 0x167   : > { %v847_v50 = vsel %vm846_vm8, %v2146_v37, %v843_v12  ;;  %v855_v51 = vmul.f32 %v2150_v46, %v832_v38  ;;  %2151 = vpow2.f32 %v1965_v32  ;;  %vm860_vm10 = vweird.f32 %v2150_v46  ;;  %v2605_v37 = vld [vmem:[%s3304_s5 + $0x1] ss:$0 sm:$0xff] }
 0x168   : > { %v852_v52 = vsel %vm849_vm9, %v851_v47, %v847_v50  ;;  %2153 = vrcp.f32 %v833_v49  ;;  %vm861_vm13 = vmor %vm859_vm12, %vm860_vm10  ;;  %v880_v9 = vand.u32 2147483648, %v833_v49  ;;  %v878_v11 = vand.u32 2147483647, %v833_v49 }
 0x169   : > { %v959_v53 = vmul.f32 %v852_v52, %v788_v26  ;;  %v856_v54 = vsub.f32 1.0, %v855_v51  ;;  %vm874_vm0 = vweird.f32 %v833_v49  ;;  %v1074_v44 = vmul.f32 %v2605_v37, %v1062_v33  ;;  %v2685_v33 = vld [vmem:[%s3304_s5 + $0x8] ss:$0 sm:$0xff] }
 0x16a   : > { %v797_v56 = vpop.f32.mrf.mxu1  ;;  %v881_v20 = vor.u32 1.1754944e-38, %v880_v9  ;;  %vm879_vm2 = vcmp.eq.f32.partialorder %v878_v11, 8.507059e+37 }
 0x16b   : > { %990 = vst.msk [vmem:[#allocation2 + $0x11] sm:$0xff] %vm967_vm5, %v959_v53  ;;  %v857_v57 = vmul.f32 %v2150_v46, %v856_v54  ;;  %v2570_v59 = vadd.f32 %v2533_v22, %v797_v56  ;;  %v2630_v53 = vld [vmem:[%s3304_s5 + $0x4] ss:$0 sm:$0xff] }
 0x16d   : > { %v2152_v60 = vpop.eup %2151  ;;  %v858_v61 = vadd.f32 %v2150_v46, %v857_v57  ;;  %v1966_v62 = vmul.f32 -1.442695, %v2570_v59 }
 0x16e   : > { %v2154_v63 = vpop.eup %2153  ;;  %v834_v2 = vadd.f32 1.0, %v2152_v60 }
 0x16f   : > { %v862_v3 = vsel %vm861_vm13, %v2150_v46, %v858_v61  ;;  %v870_v4 = vmul.f32 %v2154_v63, %v833_v49  ;;  %2155 = vpow2.f32 %v1966_v62  ;;  %vm875_vm15 = vweird.f32 %v2154_v63 }
 0x170   : > { %v867_v5 = vsel %vm864_vm14, %v866_v0, %v862_v3  ;;  %2157 = vrcp.f32 %v834_v2  ;;  %vm876_vm1 = vmor %vm874_vm0, %vm875_vm15  ;;  %v893_v38 = vand.u32 2147483647, %v834_v2  ;;  %v895_v39 = vand.u32 2147483648, %v834_v2 }
 0x171   : > { %v960_v6 = vmul.f32 %v867_v5, %v2546_v28  ;;  %v871_v7 = vsub.f32 1.0, %v870_v4  ;;  %vm889_vm4 = vweird.f32 %v834_v2  ;;  %v2623_v46 = vmul.f32 %v2614_v42, %v1126_v40  ;;  %v2644_v4 = vld [vmem:[%s3304_s5 + $0x5] ss:$0 sm:$0xff] }
 0x172   : > { %v799_v8 = vpop.f32.mrf.mxu1  ;;  %v999_v25 = vld [vmem:[#allocation2 + $0x10] sm:$0xff]  ;;  %vm894_vm11 = vcmp.eq.f32.partialorder %v893_v38, 8.507059e+37  ;;  %v896_v50 = vor.u32 1.1754944e-38, %v895_v39 }
 0x173   : > { %991 = vst.msk [vmem:[#allocation2 + $0x21] sm:$0xff] %vm967_vm5, %v960_v6  ;;  %v872_v10 = vmul.f32 %v2154_v63, %v871_v7  ;;  %v2576_v48 = vadd.f32 %v2533_v22, %v799_v8  ;;  %v1028_v36 = vmul.f32 %v2589_v18, %v999_v25  ;;  %v1063_v52 = vld [vmem:[#allocation2 + $0x11] sm:$0xff]  ;;  %v1011_v57 = vmul.f32 %v2584_v17, %v999_v25 }
 0x174   : > { %v1127_v62 = vld [vmem:[#allocation2 + $0x12] sm:$0xff]  ;;  %v1075_v5 = vmul.f32 %v2605_v37, %v1063_v52  ;;  %v1092_v9 = vmul.f32 %v2630_v53, %v1063_v52 }
 0x175   : > { %v2156_v1 = vpop.eup %2155  ;;  %v873_v14 = vadd.f32 %v2154_v63, %v872_v10  ;;  %v1967_v16 = vmul.f32 -1.442695, %v2576_v48  ;;  %v1036_v49 = vadd.f32 %v1028_v36, %v1010_v35  ;;  %v2047_v8 = vld [vmem:[%s3306_s7 + $0x18] sm:$0xff] }
 0x176   : > { %v2158_v13 = vpop.eup %2157  ;;  %v2578_v15 = vadd.f32 1.0, %v2156_v1  ;;  %v2659_v1 = vmul.f32 %v2614_v42, %v1127_v62  ;;  %1432 = vmatpush.bf16.msrb.mxu1 %v2047_v8 }
 0x177   : > { %v885_v21 = vmul.f32 %v2158_v13, %v834_v2  ;;  %v877_v26 = vsel %vm876_vm1, %v2154_v63, %v873_v14  ;;  %vm890_vm3 = vweird.f32 %v2158_v13 }
 0x178   : > { %2159 = vrcp.f32 %v2578_v15  ;;  %v882_v27 = vsel %vm879_vm2, %v881_v20, %v877_v26  ;;  %vm891_vm6 = vmor %vm889_vm4, %vm890_vm3  ;;  %v908_v0 = vand.u32 2147483647, %v2578_v15  ;;  %v910_v2 = vand.u32 2147483648, %v2578_v15  ;;  %v2672_v26 = vld [vmem:[%s3304_s5 + $0x7] ss:$0 sm:$0xff] }
 0x179   : > { %v886_v28 = vsub.f32 1.0, %v885_v21  ;;  %2161 = vpow2.f32 %v1967_v16  ;;  %v961_v30 = vmul.f32 %v882_v27, %v2558_v34  ;;  %vm904_vm8 = vweird.f32 %v2578_v15  ;;  %v2046_v16 = vld [vmem:[%s3306_s7 + $0x10] sm:$0xff] }
 0x17a   : > { %v2597_v29 = vld [vmem:[#allocation2 + $0x20] sm:$0xff]  ;;  %v802_v31 = vpop.f32.mrf.mxu1  ;;  %vm909_vm10 = vcmp.eq.f32.partialorder %v908_v0, 8.507059e+37  ;;  %v911_v25 = vor.u32 1.1754944e-38, %v910_v2  ;;  %1433 = vmatpush.bf16.msrb.mxu1 %v2046_v16 }
 0x17b   : > { %992 = vst.msk [vmem:[#allocation2 + $0x31] sm:$0xff] %vm967_vm5, %v961_v30  ;;  %v887_v41 = vmul.f32 %v2158_v13, %v886_v28  ;;  %v2609_v34 = vadd.f32 %v2533_v22, %v802_v31  ;;  %v1046_v43 = vmul.f32 %v2595_v19, %v2597_v29  ;;  %v1029_v54 = vmul.f32 %v2589_v18, %v2597_v29  ;;  %v1128_v31 = vld [vmem:[#allocation2 + $0x22] sm:$0xff] }
 0x17c   : > { %v1012_v27 = vmul.f32 %v2584_v17, %v2597_v29  ;;  %v2706_v52 = vmul.f32 %v2644_v4, %v1128_v31 }
 0x17d   : > { %v888_v12 = vadd.f32 %v2158_v13, %v887_v41  ;;  %v1968_v32 = vmul.f32 -1.442695, %v2609_v34  ;;  %v1054_v58 = vadd.f32 %v1046_v43, %v1036_v49  ;;  %v1037_v10 = vadd.f32 %v1029_v54, %v1011_v57  ;;  %v2045_v43 = vld [vmem:[%s3306_s7 + $0x8] sm:$0xff] }
 0x17e   : > { %v2619_v23 = vpop.eup %2159  ;;  %v2709_v54 = vmul.f32 %v2685_v33, %v1128_v31  ;;  %1434 = vmatpush.bf16.msrb.mxu1 %v2045_v43 }
 0x17f   : > { %v2162_v47 = vpop.eup %2161  ;;  %v900_v51 = vmul.f32 %v2619_v23, %v2578_v15  ;;  %v892_v55 = vsel %vm891_vm6, %v2158_v13, %v888_v12  ;;  %2163 = vpow2.f32 %v1968_v32  ;;  %vm905_vm7 = vweird.f32 %v2619_v23  ;;  %v1064_v13 = vld [vmem:[#allocation2 + $0x21] sm:$0xff] }
 0x180   : > { %v2634_v56 = vadd.f32 1.0, %v2162_v47  ;;  %v897_v60 = vsel %vm894_vm11, %v896_v50, %v892_v55  ;;  %v1082_v20 = vadd.f32 %v1074_v44, %v1054_v58  ;;  %vm906_vm9 = vmor %vm904_vm8, %vm905_vm7  ;;  %v2675_v15 = vmul.f32 %v2644_v4, %v1127_v62 }
 0x181   : > { %v901_v61 = vsub.f32 1.0, %v900_v51  ;;  %v962_v63 = vmul.f32 %v897_v60, %v2565_v45  ;;  %v1076_v36 = vmul.f32 %v2605_v37, %v1064_v13  ;;  %v1110_v32 = vmul.f32 %v2672_v26, %v1064_v13 }
 0x182   : > { %2165 = vrcp.f32 %v2634_v56  ;;  %v804_v3 = vpop.f32.mrf.mxu1  ;;  %v1001_v6 = vld [vmem:[#allocation2 + $0x30] sm:$0xff]  ;;  %v1100_v44 = vadd.f32 %v1092_v9, %v1082_v20  ;;  %v923_v12 = vand.u32 2147483647, %v2634_v56  ;;  %v2699_v47 = vmul.f32 %v2614_v42, %v1128_v31 }
 0x183   : > { %v902_v7 = vmul.f32 %v2619_v23, %v901_v61  ;;  %v2650_v45 = vadd.f32 %v2533_v22, %v804_v3  ;;  %v1047_v11 = vmul.f32 %v2595_v19, %v1001_v6  ;;  %993 = vst.msk [vmem:[#allocation2 + $0x41] sm:$0xff] %vm967_vm5, %v962_v63  ;;  %v1030_v38 = vmul.f32 %v2589_v18, %v1001_v6  ;;  %v2044_v63 = vld [vmem:[%s3306_s7] sm:$0xff]  ;;  %v1129_v8 = vld [vmem:[#allocation2 + $0x32] sm:$0xff] }
 0x184   : > { %v925_v51 = vand.u32 2147483648, %v2634_v56  ;;  %vm919_vm12 = vweird.f32 %v2634_v56  ;;  %v1013_v61 = vmul.f32 %v2584_v17, %v1001_v6  ;;  %v1118_v0 = vadd.f32 %v1110_v32, %v1100_v44  ;;  %1435 = vmatpush.bf16.msrb.mxu1 %v2044_v63 }
 0x185   : > { %v903_v14 = vadd.f32 %v2619_v23, %v902_v7  ;;  %v1969_v22 = vmul.f32 -1.442695, %v2650_v45  ;;  %v2164_v21 = vpop.eup %2163  ;;  %v1055_v24 = vadd.f32 %v1047_v11, %v1037_v10  ;;  %v1038_v55 = vadd.f32 %v1030_v38, %v1012_v27 }
 0x186   : > { %v2680_v30 = vadd.f32 1.0, %v2164_v21  ;;  %vm2718_vm14 = vcmp.eq.f32.partialorder %v923_v12, 8.507059e+37  ;;  %v926_v11 = vor.u32 1.1754944e-38, %v925_v51  ;;  %v1175_v51 = vmul.f32 %v2685_v33, %v1129_v8 }
 0x187   : > { %v907_v28 = vsel %vm906_vm9, %v2619_v23, %v903_v14  ;;  %2167 = vpow2.f32 %v1969_v22  ;;  %v1083_v40 = vadd.f32 %v1075_v5, %v1055_v24  ;;  %v1093_v23 = vmul.f32 %v2630_v53, %v1064_v13 }
 0x188   : > { %v2166_v35 = vpop.eup %2165  ;;  %v912_v39 = vsel %vm909_vm10, %v911_v25, %v907_v28  ;;  %2169 = vrcp.f32 %v2680_v30  ;;  %v2734_v24 = vmul.f32 %v2614_v42, %v1129_v8  ;;  %v1146_v25 = vadd.f32 %v2623_v46, %v1118_v0 }
 0x189   : > { %v963_v29 = vmul.f32 %v912_v39, %v2570_v59  ;;  %v915_v41 = vmul.f32 %v2166_v35, %v2634_v56  ;;  %v1065_v59 = vld [vmem:[#allocation2 + $0x31] sm:$0xff]  ;;  %v1101_v58 = vadd.f32 %v1093_v23, %v1083_v40  ;;  %vm920_vm13 = vweird.f32 %v2166_v35 }
 0x18a   : > { %v2701_v49 = vld [vmem:[#allocation2 + $0x40] sm:$0xff]  ;;  %v1111_v7 = vmul.f32 %v2672_v26, %v1065_v59  ;;  %v1077_v13 = vmul.f32 %v2605_v37, %v1065_v59  ;;  %vm921_vm15 = vmor %vm919_vm12, %vm920_vm13  ;;  %v1094_v22 = vmul.f32 %v2630_v53, %v1065_v59  ;;  %v938_v38 = vand.u32 2147483647, %v2680_v30 }
 0x18b   : > { %994 = vst.msk [vmem:[#allocation2 + $0x51] sm:$0xff] %vm967_vm5, %v963_v29  ;;  %v916_v50 = vsub.f32 1.0, %v915_v41  ;;  %v1048_v57 = vmul.f32 %v2595_v19, %v2701_v49  ;;  %v1031_v6 = vmul.f32 %v2589_v18, %v2701_v49  ;;  %v1066_v27 = vld [vmem:[#allocation2 + $0x41] sm:$0xff]  ;;  %v940_v39 = vand.u32 2147483648, %v2680_v30 }
 0x18c   : > { %v1119_v16 = vadd.f32 %v1111_v7, %v1101_v58  ;;  %v1158_v29 = vmul.f32 %v2644_v4, %v1129_v8  ;;  %vm934_vm0 = vweird.f32 %v2680_v30  ;;  %v1112_v12 = vmul.f32 %v2672_v26, %v1066_v27  ;;  %v1130_v2 = vld [vmem:[#allocation2 + $0x42] sm:$0xff] }
 0x18d   : > { %v2168_v60 = vpop.eup %2167  ;;  %v917_v62 = vmul.f32 %v2166_v35, %v916_v50  ;;  %v1056_v5 = vadd.f32 %v1048_v57, %v1038_v55  ;;  %v1039_v40 = vadd.f32 %v1031_v6, %v1013_v61  ;;  %v1164_v32 = vadd.f32 %v2675_v15, %v1146_v25 }
 0x18e   : > { %v2722_v3 = vadd.f32 1.0, %v2168_v60  ;;  %v2170_v9 = vpop.eup %2169  ;;  %v1147_v41 = vadd.f32 %v2659_v1, %v1119_v16  ;;  %vm939_vm2 = vcmp.eq.f32.partialorder %v938_v38, 8.507059e+37  ;;  %v941_v50 = vor.u32 1.1754944e-38, %v940_v39 }
 0x18f   : > { %v918_v10 = vadd.f32 %v2166_v35, %v917_v62  ;;  %v930_v14 = vmul.f32 %v2170_v9, %v2680_v30  ;;  %v1084_v21 = vadd.f32 %v1076_v36, %v1056_v5  ;;  %vm935_vm1 = vweird.f32 %v2170_v9 }
 0x190   : > { %2171 = vrcp.f32 %v2722_v3  ;;  %vm936_vm3 = vmor %vm934_vm0, %vm935_vm1  ;;  %v1095_v55 = vmul.f32 %v2630_v53, %v1066_v27  ;;  %v1165_v61 = vadd.f32 %v2706_v52, %v1147_v41  ;;  %v1014_v7 = vmul.f32 %v2584_v17, %v2701_v49 }
 0x191   : > { %v922_v20 = vsel %vm921_vm15, %v2166_v35, %v918_v10  ;;  %v931_v31 = vsub.f32 1.0, %v930_v14  ;;  %v1102_v23 = vadd.f32 %v1094_v22, %v1084_v21  ;;  %v953_v6 = vand.u32 2147483647, %v2722_v3 }
 0x192   : > { %v2737_v28 = vld [vmem:[#allocation2 + $0x50] sm:$0xff]  ;;  %v927_v56 = vsel %vm2718_vm14, %v926_v11, %v922_v20  ;;  %v1182_v52 = vadd.f32 %v2709_v54, %v1164_v32  ;;  %vm949_vm6 = vweird.f32 %v2722_v3  ;;  %v1159_v49 = vmul.f32 %v2644_v4, %v1130_v2 }
 0x193   : > { %v1049_v35 = vmul.f32 %v2595_v19, %v2737_v28  ;;  %v964_v36 = vmul.f32 %v927_v56, %v2576_v48  ;;  %v932_v46 = vmul.f32 %v2170_v9, %v931_v31  ;;  %v2750_v44 = vld [vmem:[#allocation2 + $0x51] sm:$0xff]  ;;  %v1120_v57 = vadd.f32 %v1112_v12, %v1102_v23 }
 0x194   : > { %v1032_v58 = vmul.f32 %v2589_v18, %v2737_v28  ;;  %v1113_v15 = vmul.f32 %v2672_v26, %v2750_v44  ;;  %v1131_v54 = vld [vmem:[#allocation2 + $0x52] sm:$0xff]  ;;  %v1183_v21 = vadd.f32 %v1175_v51, %v1165_v61  ;;  %vm954_vm7 = vcmp.eq.f32.partialorder %v953_v6, 8.507059e+37 }
 0x195   : > { %995 = vst.msk [vmem:[#allocation2 + $0x61] sm:$0xff] %vm967_vm5, %v964_v36  ;;  %v1057_v43 = vadd.f32 %v1049_v35, %v1039_v40  ;;  %v933_v59 = vadd.f32 %v2170_v9, %v932_v46  ;;  %v1148_v5 = vadd.f32 %v2699_v47, %v1120_v57  ;;  %v1096_v56 = vmul.f32 %v2630_v53, %v2750_v44  ;;  %v1007_v32 = vld [vmem:[#allocation2 + $0x90] sm:$0xff] }
 0x196   : > { %v2172_v48 = vpop.eup %2171  ;;  %v1040_v16 = vadd.f32 %v1032_v58, %v1014_v7  ;;  %v1053_v58 = vmul.f32 %v2595_v19, %v1007_v32 }
 0x197   : > { %v945_v30 = vmul.f32 %v2172_v48, %v2722_v3  ;;  %v1085_v1 = vadd.f32 %v1077_v13, %v1057_v43  ;;  %v937_v60 = vsel %vm936_vm3, %v2170_v9, %v933_v59  ;;  %v955_v9 = vand.u32 2147483648, %v2722_v3  ;;  %v2772_v13 = vld [vmem:[%s3305_s6] ss:$0 sm:$0xff] }
 0x198   : > { %v942_v62 = vsel %vm939_vm2, %v941_v50, %v937_v60  ;;  %vm950_vm4 = vweird.f32 %v2172_v48  ;;  %v1166_v14 = vadd.f32 %v1158_v29, %v1148_v5  ;;  %v1176_v3 = vmul.f32 %v2685_v33, %v1130_v2 }
 0x199   : > { %v946_v63 = vsub.f32 1.0, %v945_v30  ;;  %v1103_v0 = vadd.f32 %v1095_v55, %v1085_v1  ;;  %v965_v8 = vmul.f32 %v942_v62, %v2609_v34  ;;  %v1078_v34 = vmul.f32 %v2605_v37, %v1066_v27  ;;  %vm951_vm11 = vmor %vm949_vm6, %vm950_vm4 }
 0x19a   : > { %v956_v25 = vor.u32 1.1754944e-38, %v955_v9  ;;  %v2785_v35 = vadd.f32 %v2772_v13, %v1182_v52  ;;  %v1177_v29 = vmul.f32 %v2685_v33, %v1131_v54  ;;  %v1184_v46 = vadd.f32 %v1176_v3, %v1166_v14 }
 0x19b   : > { %v947_v10 = vmul.f32 %v2172_v48, %v946_v63  ;;  %v1121_v11 = vadd.f32 %v1113_v15, %v1103_v0  ;;  %996 = vst.msk [vmem:[#allocation2 + $0x71] sm:$0xff] %vm967_vm5, %v965_v8  ;;  %v2791_v12 = vadd.f32 %v2772_v13, %v1183_v21  ;;  %v1142_v15 = vmul.f32 %v2614_v42, %v1130_v2 }
 0x19c   : > { %v1004_v47 = vld [vmem:[#allocation2 + $0x60] sm:$0xff]  ;;  %v2798_v30 = vadd.f32 %v2772_v13, %v1184_v46  ;;  %v1079_v63 = vmul.f32 %v2605_v37, %v2750_v44  ;;  %v1160_v0 = vmul.f32 %v2644_v4, %v1131_v54 }
 0x19d   : > { %v948_v22 = vadd.f32 %v2172_v48, %v947_v10  ;;  %v1050_v20 = vmul.f32 %v2595_v19, %v1004_v47  ;;  %v1068_v38 = vld [vmem:[#allocation2 + $0x61] sm:$0xff]  ;;  %v1149_v39 = vadd.f32 %v2734_v24, %v1121_v11  ;;  %v1033_v40 = vmul.f32 %v2589_v18, %v1004_v47 }
 0x19e   : > { %v1015_v24 = vmul.f32 %v2584_v17, %v2737_v28  ;;  %v1971_v57 = vmul.f32 -1.442695, %v2791_v12  ;;  %v1071_v28 = vld [vmem:[#allocation2 + $0x91] sm:$0xff]  ;;  %v1132_v7 = vld [vmem:[#allocation2 + $0x62] sm:$0xff]  ;;  %v1972_v9 = vmul.f32 -1.442695, %v2798_v30  ;;  %v1097_v2 = vmul.f32 %v2630_v53, %v1068_v38 }
 0x19f   : > { %v952_v31 = vsel %vm951_vm11, %v2172_v48, %v948_v22  ;;  %v1058_v27 = vadd.f32 %v1050_v20, %v1040_v16  ;;  %v1167_v23 = vadd.f32 %v1159_v49, %v1149_v39  ;;  %v1114_v48 = vmul.f32 %v2672_v26, %v1068_v38 }
 0x1a0   : > { %v957_v36 = vsel %vm954_vm7, %v956_v25, %v952_v31  ;;  %v1041_v1 = vadd.f32 %v1033_v40, %v1015_v24  ;;  %v1117_v11 = vmul.f32 %v2672_v26, %v1071_v28  ;;  %v1016_v52 = vmul.f32 %v2584_v17, %v1004_v47 }
 0x1a1   : > { %v966_v41 = vmul.f32 %v957_v36, %v2650_v45  ;;  %v1086_v43 = vadd.f32 %v1078_v34, %v1058_v27  ;;  %v1185_v51 = vadd.f32 %v1177_v29, %v1167_v23  ;;  %v1970_v45 = vmul.f32 -1.442695, %v2785_v35 }
 0x1a2   : > { %v1005_v59 = vld [vmem:[#allocation2 + $0x70] sm:$0xff]  ;;  %v1143_v16 = vmul.f32 %v2614_v42, %v1131_v54  ;;  %v1178_v20 = vmul.f32 %v2685_v33, %v1132_v7  ;;  %v1080_v47 = vmul.f32 %v2605_v37, %v1068_v38  ;;  %v1161_v39 = vmul.f32 %v2644_v4, %v1132_v7 }
 0x1a3   : > { %997 = vst.msk [vmem:[#allocation2 + $0x81] sm:$0xff] %vm967_vm5, %v966_v41  ;;  %v1104_v50 = vadd.f32 %v1096_v56, %v1086_v43  ;;  %v1051_v55 = vmul.f32 %v2595_v19, %v1005_v59  ;;  %v1034_v61 = vmul.f32 %v2589_v18, %v1005_v59  ;;  %v1069_v5 = vld [vmem:[#allocation2 + $0x71] sm:$0xff]  ;;  %v2810_v6 = vadd.f32 %v2772_v13, %v1185_v51 }
 0x1a4   : > { %2173 = vpow2.f32 %v1970_v45  ;;  %v1115_v22 = vmul.f32 %v2672_v26, %v1069_v5  ;;  %v1017_v21 = vmul.f32 %v2584_v17, %v1005_v59  ;;  %v1133_v27 = vld [vmem:[#allocation2 + $0x72] sm:$0xff]  ;;  %v1081_v41 = vmul.f32 %v2605_v37, %v1069_v5 }
 0x1a5   : > { %v1122_v60 = vadd.f32 %v1114_v48, %v1104_v50  ;;  %v1059_v62 = vadd.f32 %v1051_v55, %v1041_v1  ;;  %2175 = vpow2.f32 %v1971_v57  ;;  %v1973_v34 = vmul.f32 -1.442695, %v2810_v6 }
 0x1a6   : > { %2177 = vpow2.f32 %v1972_v9  ;;  %v1042_v56 = vadd.f32 %v1034_v61, %v1016_v52  ;;  %v1179_v48 = vmul.f32 %v2685_v33, %v1133_v27 }
 0x1a7   : > { %v1150_v8 = vadd.f32 %v1142_v15, %v1122_v60  ;;  %v1087_v10 = vadd.f32 %v1079_v63, %v1059_v62  ;;  %2179 = vpow2.f32 %v1973_v34  ;;  %v1135_v62 = vld [vmem:[#allocation2 + $0x92] sm:$0xff]  ;;  %v1145_v63 = vmul.f32 %v2614_v42, %v1133_v27 }
 0x1a9   : > { %v1168_v44 = vadd.f32 %v1160_v0, %v1150_v8  ;;  %v1105_v14 = vadd.f32 %v1097_v2, %v1087_v10  ;;  %v1162_v8 = vmul.f32 %v2644_v4, %v1133_v27  ;;  %v1181_v2 = vmul.f32 %v2685_v33, %v1135_v62 }
 0x1aa   : > { %v1006_v49 = vld [vmem:[#allocation2 + $0x80] sm:$0xff]  ;;  %v2174_v40 = vpop.eup %2173 }
 0x1ab   : > { %v1035_v25 = vmul.f32 %v2589_v18, %v1006_v49  ;;  %v1052_v3 = vmul.f32 %v2595_v19, %v1006_v49  ;;  %v1123_v31 = vadd.f32 %v1115_v22, %v1105_v14  ;;  %v1186_v36 = vadd.f32 %v1178_v20, %v1168_v44  ;;  %v1070_v54 = vld [vmem:[#allocation2 + $0x81] sm:$0xff]  ;;  %v2176_v17 = vpop.eup %2175 }
 0x1ac   : > { %v1098_v18 = vmul.f32 %v2630_v53, %v1069_v5  ;;  %v2830_v38 = vadd.f32 1.0, %v2174_v40  ;;  %v2178_v23 = vpop.eup %2177  ;;  %v2833_v59 = vadd.f32 1.0, %v2176_v17  ;;  %v1099_v50 = vmul.f32 %v2630_v53, %v1070_v54  ;;  %v1134_v61 = vld [vmem:[#allocation2 + $0x82] sm:$0xff] }
 0x1ad   : > { %v1043_v29 = vadd.f32 %v1035_v25, %v1017_v21  ;;  %v1060_v46 = vadd.f32 %v1052_v3, %v1042_v56  ;;  %v1151_v43 = vadd.f32 %v1143_v16, %v1123_v31  ;;  %v2828_v19 = vadd.f32 %v2772_v13, %v1186_v36 }
 0x1ae   : > { %2181 = vrcp.f32 %v2830_v38  ;;  %v1116_v55 = vmul.f32 %v2672_v26, %v1070_v54  ;;  %v2839_v57 = vadd.f32 1.0, %v2178_v23  ;;  %v1144_v53 = vmul.f32 %v2614_v42, %v1132_v7 }
 0x1af   : > { %v1061_v32 = vadd.f32 %v1053_v58, %v1043_v29  ;;  %v1088_v24 = vadd.f32 %v1080_v47, %v1060_v46  ;;  %v1169_v37 = vadd.f32 %v1161_v39, %v1151_v43  ;;  %v1974_v51 = vmul.f32 -1.442695, %v2828_v19  ;;  %v2180_v58 = vpop.eup %2179 }
 0x1b0   : > { %v1163_v10 = vmul.f32 %v2644_v4, %v1134_v61  ;;  %v2854_v52 = vadd.f32 1.0, %v2180_v58  ;;  %v1180_v34 = vmul.f32 %v2685_v33, %v1134_v61  ;;  %v1243_v14 = vand.u32 2147483647, %v2830_v38 }
 0x1b1   : > { %v1089_v45 = vadd.f32 %v1081_v41, %v1061_v32  ;;  %v1106_v1 = vadd.f32 %v1098_v18, %v1088_v24  ;;  %v1187_v28 = vadd.f32 %v1179_v48, %v1169_v37  ;;  %2183 = vpow2.f32 %v1974_v51 }
 0x1b2   : > { %2185 = vrcp.f32 %v2833_v59  ;;  %v1245_v21 = vand.u32 2147483648, %v2830_v38  ;;  %v1258_v27 = vand.u32 2147483647, %v2833_v59  ;;  %vm1239_vm8 = vweird.f32 %v2830_v38 }
 0x1b3   : > { %v1107_v60 = vadd.f32 %v1099_v50, %v1089_v45  ;;  %v1124_v15 = vadd.f32 %v1116_v55, %v1106_v1  ;;  %v2845_v0 = vadd.f32 %v2772_v13, %v1187_v28  ;;  %2187 = vrcp.f32 %v2839_v57 }
 0x1b4   : > { %v2849_v9 = vpop.eup %2181  ;;  %vm1254_vm9 = vweird.f32 %v2833_v59  ;;  %vm2883_vm10 = vcmp.eq.f32.partialorder %v1243_v14, 8.507059e+37  ;;  %v1246_v54 = vor.u32 1.1754944e-38, %v1245_v21  ;;  %v1260_v41 = vand.u32 2147483648, %v2833_v59 }
 0x1b5   : > { %v1125_v5 = vadd.f32 %v1117_v11, %v1107_v60  ;;  %v1152_v26 = vadd.f32 %v1144_v53, %v1124_v15  ;;  %v1975_v7 = vmul.f32 -1.442695, %v2845_v0  ;;  %v1235_v11 = vmul.f32 %v2849_v9, %v2830_v38 }
 0x1b6   : > { %vm1240_vm12 = vweird.f32 %v2849_v9  ;;  %vm2895_vm13 = vcmp.eq.f32.partialorder %v1258_v27, 8.507059e+37  ;;  %v1273_v37 = vand.u32 2147483647, %v2839_v57  ;;  %v1275_v51 = vand.u32 2147483648, %v2839_v57 }
 0x1b7   : > { %v1153_v42 = vadd.f32 %v1145_v63, %v1125_v5  ;;  %v1170_v44 = vadd.f32 %v1162_v8, %v1152_v26  ;;  %v2184_v49 = vpop.eup %2183  ;;  %2189 = vpow2.f32 %v1975_v7  ;;  %v1236_v20 = vsub.f32 1.0, %v1235_v11  ;;  %vm2910_vm15 = vmor %vm1239_vm8, %vm1240_vm12 }
 0x1b8   : > { %v2860_v22 = vpop.eup %2185  ;;  %v2863_v25 = vadd.f32 1.0, %v2184_v49  ;;  %2191 = vrcp.f32 %v2854_v52  ;;  %v1288_v45 = vand.u32 2147483647, %v2854_v52  ;;  %v1261_v58 = vor.u32 1.1754944e-38, %v1260_v41 }
 0x1b9   : > { %v1171_v4 = vadd.f32 %v1163_v10, %v1153_v42  ;;  %v1188_v16 = vadd.f32 %v1180_v34, %v1170_v44  ;;  %v1250_v56 = vmul.f32 %v2860_v22, %v2833_v59  ;;  %v2868_v33 = vpop.eup %2187  ;;  %v1237_v31 = vmul.f32 %v2849_v9, %v1236_v20 }
 0x1ba   : > { %v1265_v36 = vmul.f32 %v2868_v33, %v2839_v57  ;;  %2193 = vrcp.f32 %v2863_v25  ;;  %vm1255_vm14 = vweird.f32 %v2860_v22  ;;  %vm1269_vm0 = vweird.f32 %v2839_v57 }
 0x1bb   : > { %v1189_v3 = vadd.f32 %v1181_v2, %v1171_v4  ;;  %v2871_v47 = vadd.f32 %v2772_v13, %v1188_v16  ;;  %v1251_v39 = vsub.f32 1.0, %v1250_v56  ;;  %v1238_v32 = vadd.f32 %v2849_v9, %v1237_v31  ;;  %vm2924_vm2 = vmor %vm1254_vm9, %vm1255_vm14 }
 0x1bc   : > { %v1266_v43 = vsub.f32 1.0, %v1265_v36  ;;  %vm1270_vm1 = vweird.f32 %v2868_v33  ;;  %v1290_v60 = vand.u32 2147483648, %v2854_v52  ;;  %vm2928_vm3 = vcmp.eq.f32.partialorder %v1273_v37, 8.507059e+37 }
 0x1bd   : > { %v2880_v40 = vadd.f32 %v2772_v13, %v1189_v3  ;;  %v1976_v29 = vmul.f32 -1.442695, %v2871_v47  ;;  %v2190_v17 = vpop.eup %2189  ;;  %v1252_v18 = vmul.f32 %v2860_v22, %v1251_v39  ;;  %v1242_v15 = vsel %vm2910_vm15, %v2849_v9, %v1238_v32  ;;  %vm2949_vm7 = vmor %vm1269_vm0, %vm1270_vm1 }
 0x1be   : > { %v2892_v23 = vadd.f32 1.0, %v2190_v17  ;;  %v2192_v48 = vpop.eup %2191  ;;  %v1267_v50 = vmul.f32 %v2868_v33, %v1266_v43  ;;  %v1276_v5 = vor.u32 1.1754944e-38, %v1275_v51  ;;  %vm1284_vm4 = vweird.f32 %v2854_v52 }
 0x1bf   : > { %2195 = vpow2.f32 %v1976_v29  ;;  %v1977_v13 = vmul.f32 -1.442695, %v2880_v40  ;;  %v1253_v1 = vadd.f32 %v2860_v22, %v1252_v18  ;;  %v1280_v55 = vmul.f32 %v2192_v48, %v2854_v52 }
 0x1c0   : > { %v1268_v61 = vadd.f32 %v2868_v33, %v1267_v50  ;;  %v2194_v38 = vpop.eup %2193  ;;  %vm2933_vm6 = vcmp.eq.f32.partialorder %v1288_v45, 8.507059e+37  ;;  %vm1285_vm11 = vweird.f32 %v2192_v48  ;;  %v1247_v7 = vsel %vm2883_vm10, %v1246_v54, %v1242_v15 }
 0x1c1   : > { %2197 = vpow2.f32 %v1977_v13  ;;  %v1281_v62 = vsub.f32 1.0, %v1280_v55  ;;  %v1257_v59 = vsel %vm2924_vm2, %v2860_v22, %v1253_v1  ;;  %v1295_v10 = vmul.f32 %v2194_v38, %v2863_v25  ;;  %vm2964_vm8 = vmor %vm1284_vm4, %vm1285_vm11 }
 0x1c2   : > { %2199 = vrcp.f32 %v2892_v23  ;;  %v1291_v44 = vor.u32 1.1754944e-38, %v1290_v60  ;;  %v1303_v34 = vand.u32 2147483647, %v2863_v25  ;;  %v1272_v49 = vsel %vm2949_vm7, %v2868_v33, %v1268_v61 }
 0x1c3   : > { %v1282_v9 = vmul.f32 %v2192_v48, %v1281_v62  ;;  %v1296_v22 = vsub.f32 1.0, %v1295_v10  ;;  %v1305_v4 = vand.u32 2147483648, %v2863_v25  ;;  %v1262_v57 = vsel %vm2895_vm13, %v1261_v58, %v1257_v59 }
 0x1c4   : > { %v1318_v21 = vand.u32 2147483647, %v2892_v23  ;;  %vm1300_vm9 = vweird.f32 %v2194_v38  ;;  %v1320_v31 = vand.u32 2147483648, %v2892_v23  ;;  %v1277_v27 = vsel %vm2928_vm3, %v1276_v5, %v1272_v49 }
 0x1c5   : > { %v2196_v8 = vpop.eup %2195  ;;  %v1283_v14 = vadd.f32 %v2192_v48, %v1282_v9  ;;  %v1297_v3 = vmul.f32 %v2194_v38, %v1296_v22  ;;  %vm1299_vm10 = vweird.f32 %v2863_v25  ;;  %vm1304_vm12 = vcmp.eq.f32.partialorder %v1303_v34, 8.507059e+37 }
 0x1c6   : > { %v2941_v2 = vadd.f32 1.0, %v2196_v8  ;;  %vm1314_vm13 = vweird.f32 %v2892_v23  ;;  %v2980_v36 = vmul.f32 %v1262_v57, %v2791_v12  ;;  %vm1301_vm14 = vmor %vm1299_vm10, %vm1300_vm9  ;;  %v1306_v46 = vor.u32 1.1754944e-38, %v1305_v4 }
 0x1c7   : > { %v2198_v11 = vpop.eup %2197  ;;  %v1287_v33 = vsel %vm2964_vm8, %v2192_v48, %v1283_v14  ;;  %v1298_v39 = vadd.f32 %v2194_v38, %v1297_v3  ;;  %v2985_v41 = vmul.f32 %v1247_v7, %v2785_v35  ;;  %vm2987_vm15 = vcmp.eq.f32.partialorder %v1318_v21, 8.507059e+37 }
 0x1c8   : > { %v2958_v16 = vadd.f32 1.0, %v2198_v11  ;;  %2201 = vrcp.f32 %v2941_v2  ;;  %v2200_v56 = vpop.eup %2199  ;;  %v1292_v29 = vsel %vm2933_vm6, %v1291_v44, %v1287_v33  ;;  %v1321_v18 = vor.u32 1.1754944e-38, %v1320_v31 }
 0x1c9   : > { %v1310_v52 = vmul.f32 %v2200_v56, %v2892_v23  ;;  %v1302_v25 = vsel %vm1301_vm14, %v2194_v38, %v1298_v39  ;;  %v2992_v43 = vmul.f32 %v1277_v27, %v2798_v30  ;;  %vm1315_vm0 = vweird.f32 %v2200_v56 }
 0x1ca   : > { %2203 = vrcp.f32 %v2958_v16  ;;  %v1307_v13 = vsel %vm1304_vm12, %v1306_v46, %v1302_v25  ;;  %vm1329_vm1 = vweird.f32 %v2941_v2  ;;  %v1333_v35 = vand.u32 2147483647, %v2941_v2  ;;  %vm1316_vm2 = vmor %vm1314_vm13, %vm1315_vm0 }
 0x1cb   : > { %v1311_v54 = vsub.f32 1.0, %v1310_v52  ;;  %v2998_v48 = vmul.f32 %v1292_v29, %v2810_v6  ;;  %v1363_v50 = vsel %vm967_vm5, %v2980_v36, 0.0  ;;  %v1335_v30 = vand.u32 2147483648, %v2941_v2 }
 0x1cc   : > { %v1362_v45 = vsel %vm967_vm5, %v2985_v41, 0.0  ;;  %v3009_v28 = vmul.f32 %v1307_v13, %v2828_v19  ;;  %v1365_v6 = vsel %vm967_vm5, %v2992_v43, 0.0  ;;  %v2313_v15 = vmov 64.0  }
 0x1cd   : > { %v1312_v32 = vmul.f32 %v2200_v56, %v1311_v54  ;;  %v1364_v60 = vadd.f32 %v1363_v50, %v1362_v45  ;;  %2205 = vrcp.f32 %v2313_v15  ;;  %v1367_v38 = vsel %vm967_vm5, %v2998_v48, 0.0 }
 0x1ce   : > { %v2202_v12 = vpop.eup %2201  ;;  %v1348_v53 = vand.u32 2147483647, %v2958_v16  ;;  %v1350_v19 = vand.u32 2147483648, %v2958_v16  ;;  %v1369_v59 = vsel %vm967_vm5, %v3009_v28, 0.0  ;;  %vm1334_vm11 = vcmp.eq.f32.partialorder %v1333_v35, 8.507059e+37 }
 0x1cf   : > { %v1325_v24 = vmul.f32 %v2202_v12, %v2941_v2  ;;  %v1313_v51 = vadd.f32 %v2200_v56, %v1312_v32  ;;  %vm1330_vm3 = vweird.f32 %v2202_v12  ;;  %v1366_v5 = vadd.f32 %v1365_v6, %v1364_v60  ;;  %v1462_v32 = vld [vmem:[%s3308_s9] sm:$0x3] }
 0x1d0   : > { %v2204_v37 = vpop.eup %2203  ;;  %vm1331_vm6 = vmor %vm1329_vm1, %vm1330_vm3  ;;  %v1336_v9 = vor.u32 1.1754944e-38, %v1335_v30  ;;  %vm1344_vm7 = vweird.f32 %v2958_v16  ;;  %v1351_v11 = vor.u32 1.1754944e-38, %v1350_v19  ;;  %vm1349_vm9 = vcmp.eq.f32.partialorder %v1348_v53, 8.507059e+37  ;;  %v1463_v53 = vld [vmem:[%s3309_s10] sm:$0x1]  ;;  %v2051_v19 = vld [vmem:[%s3310_s11 + $0x18] sm:$0xff] }
 0x1d1   : > { %v1326_v1 = vsub.f32 1.0, %v1325_v24  ;;  %v1340_v55 = vmul.f32 %v2204_v37, %v2958_v16  ;;  %v1317_v58 = vsel %vm1316_vm2, %v2200_v56, %v1313_v51  ;;  %vm1345_vm4 = vweird.f32 %v2204_v37 }
 0x1d2   : > { %v1322_v61 = vsel %vm2987_vm15, %v1321_v18, %v1317_v58  ;;  %v1368_v10 = vadd.f32 %v1367_v38, %v1366_v5  ;;  %vm1346_vm8 = vmor %vm1344_vm7, %vm1345_vm4  ;;  %v1400_v18 = vld [vmem:[%s3307_s8] sm:$0x1]  ;;  %vm1468_vm12 = vcmask 1041408   ;;  %vm1464_vm1 = vcmask 31744  }
 0x1d3   : > { %v1327_v62 = vmul.f32 %v2202_v12, %v1326_v1  ;;  %v1341_v23 = vsub.f32 1.0, %v1340_v55  ;;  %v3020_v63 = vmul.f32 %v1322_v61, %v2845_v0  ;;  %v2206_v44 = vpop.eup %2205  ;;  %v1470_v24 = vsel %vm1468_vm12, %v1462_v32, 0 }
 0x1d4   : > { %v1370_v49 = vadd.f32 %v1369_v59, %v1368_v10  ;;  %v1384_v22 = vmul.f32 64.0, %v2206_v44  ;;  %vm1388_vm10 = vweird.f32 %v2206_v44  ;;  %1479 = vmatpush.bf16.msra.mxu3 %v1470_v24  ;;  %vm1614_vm7 = vcmask 195584  }
 0x1d5   : > { %v1328_v26 = vadd.f32 %v2202_v12, %v1327_v62  ;;  %v1342_v8 = vmul.f32 %v2204_v37, %v1341_v23  ;;  %v1371_v0 = vsel %vm967_vm5, %v3020_v63, 0.0 }
 0x1d6   : > { %v1372_v57 = vadd.f32 %v1371_v0, %v1370_v49  ;;  %v1385_v33 = vsub.f32 1.0, %v1384_v22 }
 0x1d7   : > { %v1332_v7 = vsel %vm1331_vm6, %v2202_v12, %v1328_v26  ;;  %v1343_v42 = vadd.f32 %v2204_v37, %v1342_v8  ;;  %v2050_v8 = vld [vmem:[%s3310_s11 + $0x10] sm:$0xff] }
 0x1d8   : > { %v1337_v34 = vsel %vm1334_vm11, %v1336_v9, %v1332_v7  ;;  %v1386_v27 = vmul.f32 %v2206_v44, %v1385_v33  ;;  %1569 = vmatpush.bf16.msrb.mxu3 %v2051_v19  ;;  %v2049_v9 = vld [vmem:[%s3310_s11 + $0x8] sm:$0xff]  ;;  %v2048_v7 = vld [vmem:[%s3310_s11] sm:$0xff]  ;;  %vm1627_vm11 = vcmask 1043456  }
 0x1d9   : > { %v1347_v14 = vsel %vm1346_vm8, %v2204_v37, %v1343_v42  ;;  %v3031_v2 = vmul.f32 %v1337_v34, %v2871_v47 }
 0x1da   : > { %v1352_v4 = vsel %vm1349_vm9, %v1351_v11, %v1347_v14  ;;  %v1387_v39 = vadd.f32 %v2206_v44, %v1386_v27 }
 0x1db   : > { %v3034_v20 = vmul.f32 %v1352_v4, %v2880_v40  ;;  %v1373_v16 = vsel %vm967_vm5, %v3031_v2, 0.0 }
 0x1dc   : > { %v1374_v21 = vadd.f32 %v1373_v16, %v1372_v57  ;;  %v3040_v54 = vsel %vm1388_vm10, %v2206_v44, %v1387_v39  ;;  %1570 = vmatpush.bf16.msrb.mxu3 %v2050_v8 }
 0x1dd   : > { %v1375_v56 = vsel %vm967_vm5, %v3034_v20, 0.0 }
 0x1de   : > { %v1376_v3 = vadd.f32 %v1375_v56, %v1374_v21 }
 0x1e0   : > { %v1377_v31 = vrot.slane %v1376_v3, 4  ;;  %1571 = vmatpush.bf16.msrb.mxu3 %v2049_v9 }
 0x1e2   : > { %v1378_v52 = vadd.f32 %v1377_v31, %v1376_v3 }
 0x1e4   : > { %v1379_v47 = vrot.slane %v1378_v52, 2  ;;  %1572 = vmatpush.bf16.msrb.mxu3 %v2048_v7 }
 0x1e6   : > { %v1380_v29 = vadd.f32 %v1379_v47, %v1378_v52 }
 0x1e8   : > { %v1381_v46 = vrot.slane %v1380_v29, 1 }
 0x1ea   : > { %v1382_v40 = vadd.f32 %v1381_v46, %v1380_v29 }
 0x1ec   : > { %v1390_v25 = vmul.f32 %v3040_v54, %v1382_v40 }
 0x1ee   : > { %v1391_v17 = vpack.c.bf16 %v1390_v25, %v1390_v25 }
 0x1f0   : > { %1994 = vmatmul.msk.bf16.vlgmr.msrb.gmra.mxu1 %vm967_vm5, %v1391_v17 }
 0x26d   : > { %v1437_v12 = vpop.f32.mrf.mxu1 }
 0x26e   : > { %v1438_v13 = vadd.f32 %v1437_v12, %v1400_v18 }
 0x270   : > { %v1995_v35 = vmul.f32 -1.442695, %v1438_v13 }
 0x272   : > { %2207 = vpow2.f32 %v1995_v35 }
 0x275   : > { %v1439_v50 = vpop.f32.mrf.mxu1 }
 0x278   : > { %v2208_v37 = vpop.eup %2207 }
 0x279   : > { %v1444_v51 = vadd.f32 1.0, %v2208_v37 }
 0x27b   : > { %2209 = vrcp.f32 %v1444_v51  ;;  %v1456_v55 = vand.u32 2147483648, %v1444_v51  ;;  %v1454_v58 = vand.u32 2147483647, %v1444_v51  ;;  %vm1450_vm14 = vweird.f32 %v1444_v51 }
 0x27d   : > { %v1457_v15 = vor.u32 1.1754944e-38, %v1456_v55  ;;  %vm1455_vm0 = vcmp.eq.f32.partialorder %v1454_v58, 8.507059e+37 }
 0x281   : > { %v2210_v30 = vpop.eup %2209 }
 0x282   : > { %v1446_v45 = vmul.f32 %v2210_v30, %v1444_v51  ;;  %vm1451_vm13 = vweird.f32 %v2210_v30 }
 0x283   : > { %vm1452_vm15 = vmor %vm1450_vm14, %vm1451_vm13 }
 0x284   : > { %v1447_v1 = vsub.f32 1.0, %v1446_v45 }
 0x286   : > { %v1448_v6 = vmul.f32 %v2210_v30, %v1447_v1 }
 0x288   : > { %v1449_v60 = vadd.f32 %v2210_v30, %v1448_v6 }
 0x28a   : > { %v1453_v61 = vsel %vm1452_vm15, %v2210_v30, %v1449_v60 }
 0x28b   : > { %v1458_v62 = vsel %vm1455_vm0, %v1457_v15, %v1453_v61 }
 0x28c   : > { %v1460_v23 = vmul.f32 %v1458_v62, %v1438_v13 }
 0x28e   : > { %v1461_v38 = vpack.c.bf16 %v1460_v23, %v1460_v23  ;;  %v3093_v23 = vld [vmem:[%s3313_s14] ss:$0 sm:$0xff] }
 0x290   : > { %1996 = vmatmul.msk.bf16.vlgmr.msra.gmra.mxu3 %vm1464_vm1, %v1461_v38 }
 0x313   : > { %v1481_v5 = vpop.f32.mrf.mxu3 }
 0x314   : > { %v1482_v26 = vadd.f32 %v1481_v5, %v1463_v53 }
 0x316   : > { %v1997_v59 = vmul.f32 -1.442695, %v1482_v26 }
 0x318   : > { %2211 = vpow2.f32 %v1997_v59 }
 0x31b   : > { %v1483_v10 = vpop.f32.mrf.mxu3 }
 0x31e   : > { %v2212_v42 = vpop.eup %2211 }
 0x31f   : > { %v1488_v0 = vadd.f32 1.0, %v2212_v42 }
 0x321   : > { %2213 = vrcp.f32 %v1488_v0  ;;  %v1500_v49 = vand.u32 2147483648, %v1488_v0  ;;  %v1498_v22 = vand.u32 2147483647, %v1488_v0  ;;  %vm1494_vm3 = vweird.f32 %v1488_v0 }
 0x323   : > { %v1501_v57 = vor.u32 1.1754944e-38, %v1500_v49  ;;  %vm1499_vm6 = vcmp.eq.f32.partialorder %v1498_v22, 8.507059e+37 }
 0x327   : > { %v2214_v44 = vpop.eup %2213 }
 0x328   : > { %v1490_v34 = vmul.f32 %v2214_v44, %v1488_v0  ;;  %vm1495_vm2 = vweird.f32 %v2214_v44 }
 0x329   : > { %vm1496_vm4 = vmor %vm1494_vm3, %vm1495_vm2 }
 0x32a   : > { %v1491_v11 = vsub.f32 1.0, %v1490_v34 }
 0x32c   : > { %v1492_v14 = vmul.f32 %v2214_v44, %v1491_v11 }
 0x32e   : > { %v1493_v4 = vadd.f32 %v2214_v44, %v1492_v14 }
 0x330   : > { %v1497_v16 = vsel %vm1496_vm4, %v2214_v44, %v1493_v4 }
 0x331   : > { %v1502_v21 = vsel %vm1499_vm6, %v1501_v57, %v1497_v16 }
 0x332   : > { %v1504_v56 = vperm.slane %v1502_v21, 0 }
 0x334   : > { %v1505_v33 = vmul.f32 %v1504_v56, %v2985_v41  ;;  %v1506_v3 = vmul.f32 %v1504_v56, %v2980_v36  ;;  %v1507_v27 = vmul.f32 %v1504_v56, %v2992_v43  ;;  %v1508_v52 = vmul.f32 %v1504_v56, %v2998_v48  ;;  %v1600_v43 = vld [vmem:[%s3312_s13 + $0x8] sm:$0xf] }
 0x335   : > { %v1509_v39 = vmul.f32 %v1504_v56, %v3009_v28  ;;  %v1510_v29 = vmul.f32 %v1504_v56, %v3020_v63  ;;  %v1511_v41 = vmul.f32 %v1504_v56, %v3031_v2  ;;  %v1512_v36 = vmul.f32 %v1504_v56, %v3034_v20  ;;  %v2052_v63 = vld [vmem:[%s3312_s13] sm:$0xff] }
 0x336   : > { %v1513_v31 = vpack.c.bf16 %v1506_v3, %v1505_v33  ;;  %v1514_v47 = vpack.c.bf16 %v1508_v52, %v1507_v27  ;;  %v1610_v48 = vunpack.c.l.b16 %v1600_v43  ;;  %v2107_v20 = vld [vmem:[%s3311_s12] ss:$0 sm:$0xff] }
 0x337   : > { %v1515_v46 = vpack.c.bf16 %v1510_v29, %v1509_v39  ;;  %v1516_v40 = vpack.c.bf16 %v1512_v36, %v1511_v41 }
 0x338   : > { %2014 = vmatmul.msk.bf16.vlgmr.msrb.gmra.mxu3 %vm967_vm5, %v1513_v31  ;;  %v1612_v25 = vpack.c.b16 %v1610_v48, %v1610_v48 }
 0x33a   : > { %v1629_v28 = vsel %vm1627_vm11, %v1612_v25, 0 }
 0x33b   : > { %1637 = vmatpush.bf16.msra.mxu2 %v1629_v28 }
 0x33f   : > { %1638 = vmatpush.bf16.msra.mxu2 %v2052_v63 }
 0x348   : > { %2015 = vmatmul.msk.bf16.gmra.mxu3 %vm967_vm5, %v1514_v47 }
 0x358   : > { %2016 = vmatmul.msk.bf16.gmra.mxu3 %vm967_vm5, %v1515_v46 }
 0x368   : > { %2017 = vmatmul.msk.bf16.gmra.mxu3 %vm967_vm5, %v1516_v40 }
 0x3bb   : > { %v1574_v2 = vpop.f32.mrf.mxu3 }
 0x3bc   : > { %v1575_v18 = vadd.f32 %v2107_v20, %v1574_v2 }
 0x3c3   : > { %v1576_v17 = vpop.f32.mrf.mxu3 }
 0x3c4   : > { %v1577_v12 = vadd.f32 %v2107_v20, %v1576_v17 }
 0x3c6   : > { %v1594_v13 = vpack.c.bf16 %v1577_v12, %v1575_v18 }
 0x3c8   : > { %2022 = vmatmul.msk.bf16.vlgmr.msra.gmra.mxu2 %vm1614_vm7, %v1594_v13 }
 0x3cb   : > { %v1579_v32 = vpop.f32.mrf.mxu3 }
 0x3cc   : > { %v1580_v35 = vadd.f32 %v2107_v20, %v1579_v32 }
 0x3d3   : > { %v1581_v24 = vpop.f32.mrf.mxu3 }
 0x3d4   : > { %v1582_v50 = vadd.f32 %v2107_v20, %v1581_v24 }
 0x3d6   : > { %v1595_v37 = vpack.c.bf16 %v1582_v50, %v1580_v35 }
 0x3d8   : > { %2023 = vmatmul.msk.bf16.gmra.mxu2 %vm1614_vm7, %v1595_v37 }
 0x3db   : > { %v1584_v51 = vpop.f32.mrf.mxu3 }
 0x3dc   : > { %v1585_v45 = vadd.f32 %v2107_v20, %v1584_v51 }
 0x3e3   : > { %v1586_v30 = vpop.f32.mrf.mxu3 }
 0x3e4   : > { %v1587_v1 = vadd.f32 %v2107_v20, %v1586_v30 }
 0x3e6   : > { %v1596_v55 = vpack.c.bf16 %v1587_v1, %v1585_v45 }
 0x3e8   : > { %2024 = vmatmul.msk.bf16.gmra.mxu2 %vm1614_vm7, %v1596_v55 }
 0x3eb   : > { %v1589_v6 = vpop.f32.mrf.mxu3 }
 0x3ec   : > { %v1590_v60 = vadd.f32 %v2107_v20, %v1589_v6 }
 0x3f3   : > { %v1591_v58 = vpop.f32.mrf.mxu3 }
 0x3f4   : > { %v1592_v15 = vadd.f32 %v2107_v20, %v1591_v58 }
 0x3f6   : > { %v1597_v61 = vpack.c.bf16 %v1592_v15, %v1590_v60 }
 0x3f8   : > { %2025 = vmatmul.msk.bf16.gmra.mxu2 %vm1614_vm7, %v1597_v61 }
 0x44b   : > { %v1640_v62 = vpop.f32.mrf.mxu2 }
 0x44c   : > { %v3096_v53 = vadd.f32 %v3093_v23, %v1640_v62 }
 0x44e   : > { %v2026_v19 = vmul.f32 -1.442695, %v3096_v53 }
 0x450   : > { %2215 = vpow2.f32 %v2026_v19 }
 0x453   : > { %v1642_v38 = vpop.f32.mrf.mxu2 }
 0x454   : > { %v3100_v5 = vadd.f32 %v3093_v23, %v1642_v38 }
 0x456   : > { %v2027_v8 = vmul.f32 -1.442695, %v3100_v5  ;;  %v2216_v10 = vpop.eup %2215 }
 0x457   : > { %v1684_v0 = vadd.f32 1.0, %v2216_v10 }
 0x458   : > { %2217 = vpow2.f32 %v2027_v8 }
 0x459   : > { %v1703_v32 = vand.u32 2147483648, %v1684_v0  ;;  %vm1697_vm9 = vweird.f32 %v1684_v0  ;;  %v1701_v50 = vand.u32 2147483647, %v1684_v0 }
 0x45b   : > { %v1645_v26 = vpop.f32.mrf.mxu2  ;;  %v1704_v55 = vor.u32 1.1754944e-38, %v1703_v32  ;;  %vm1702_vm13 = vcmp.eq.f32.partialorder %v1701_v50, 8.507059e+37 }
 0x45c   : > { %v3104_v59 = vadd.f32 %v3093_v23, %v1645_v26 }
 0x45e   : > { %v2028_v9 = vmul.f32 -1.442695, %v3104_v59  ;;  %v2218_v34 = vpop.eup %2217 }
 0x45f   : > { %v3111_v11 = vadd.f32 1.0, %v2218_v34 }
 0x460   : > { %2219 = vpow2.f32 %v2028_v9 }
 0x461   : > { %vm1712_vm14 = vweird.f32 %v3111_v11  ;;  %v1716_v15 = vand.u32 2147483647, %v3111_v11  ;;  %v1718_v61 = vand.u32 2147483648, %v3111_v11 }
 0x463   : > { %v1647_v7 = vpop.f32.mrf.mxu2  ;;  %vm1717_vm1 = vcmp.eq.f32.partialorder %v1716_v15, 8.507059e+37  ;;  %v1719_v34 = vor.u32 1.1754944e-38, %v1718_v61 }
 0x464   : > { %v3108_v42 = vadd.f32 %v3093_v23, %v1647_v7 }
 0x466   : > { %v2029_v44 = vmul.f32 -1.442695, %v3108_v42  ;;  %v2220_v14 = vpop.eup %2219 }
 0x467   : > { %v3118_v16 = vadd.f32 1.0, %v2220_v14 }
 0x468   : > { %2221 = vpow2.f32 %v2029_v44 }
 0x469   : > { %2223 = vrcp.f32 %v1684_v0  ;;  %vm1727_vm2 = vweird.f32 %v3118_v16  ;;  %v1731_v14 = vand.u32 2147483647, %v3118_v16 }
 0x46a   : > { %2225 = vrcp.f32 %v3111_v11 }
 0x46b   : > { %v1650_v49 = vpop.f32.mrf.mxu2  ;;  %vm1732_vm7 = vcmp.eq.f32.partialorder %v1731_v14, 8.507059e+37 }
 0x46c   : > { %v3114_v22 = vadd.f32 %v3093_v23, %v1650_v49 }
 0x46e   : > { %v2030_v4 = vmul.f32 -1.442695, %v3114_v22  ;;  %v2222_v57 = vpop.eup %2221 }
 0x46f   : > { %v2224_v21 = vpop.eup %2223  ;;  %v3120_v56 = vadd.f32 1.0, %v2222_v57 }
 0x470   : > { %2227 = vpow2.f32 %v2030_v4  ;;  %v1693_v33 = vmul.f32 %v2224_v21, %v1684_v0  ;;  %v3123_v31 = vpop.eup %2225  ;;  %vm1698_vm8 = vweird.f32 %v2224_v21 }
 0x471   : > { %2229 = vrcp.f32 %v3118_v16  ;;  %v1708_v29 = vmul.f32 %v3123_v31, %v3111_v11  ;;  %vm3155_vm10 = vmor %vm1697_vm9, %vm1698_vm8  ;;  %vm1713_vm12 = vweird.f32 %v3123_v31  ;;  %v1733_v11 = vand.u32 2147483648, %v3118_v16 }
 0x472   : > { %2231 = vrcp.f32 %v3120_v56  ;;  %v1694_v39 = vsub.f32 1.0, %v1693_v33  ;;  %vm3170_vm15 = vmor %vm1712_vm14, %vm1713_vm12  ;;  %vm1742_vm11 = vweird.f32 %v3120_v56 }
 0x473   : > { %v1652_v3 = vpop.f32.mrf.mxu2  ;;  %v1709_v40 = vsub.f32 1.0, %v1708_v29 }
 0x474   : > { %v3126_v27 = vadd.f32 %v3093_v23, %v1652_v3  ;;  %v1695_v36 = vmul.f32 %v2224_v21, %v1694_v39  ;;  %v1746_v3 = vand.u32 2147483647, %v3120_v56 }
 0x475   : > { %v1710_v18 = vmul.f32 %v3123_v31, %v1709_v40 }
 0x476   : > { %v2228_v52 = vpop.eup %2227  ;;  %v2031_v47 = vmul.f32 -1.442695, %v3126_v27  ;;  %v1696_v17 = vadd.f32 %v2224_v21, %v1695_v36 }
 0x477   : > { %v3132_v46 = vadd.f32 1.0, %v2228_v52  ;;  %v3134_v41 = vpop.eup %2229  ;;  %v1711_v30 = vadd.f32 %v3123_v31, %v1710_v18  ;;  %v1734_v52 = vor.u32 1.1754944e-38, %v1733_v11 }
 0x478   : > { %2233 = vpow2.f32 %v2031_v47  ;;  %v3137_v48 = vpop.eup %2231  ;;  %v1723_v25 = vmul.f32 %v3134_v41, %v3118_v16  ;;  %v1700_v51 = vsel %vm3155_vm10, %v2224_v21, %v1696_v17  ;;  %vm1728_vm0 = vweird.f32 %v3134_v41 }
 0x479   : > { %2235 = vrcp.f32 %v3132_v46  ;;  %v1738_v12 = vmul.f32 %v3137_v48, %v3120_v56  ;;  %v1705_v38 = vsel %vm1702_vm13, %v1704_v55, %v1700_v51  ;;  %vm3195_vm3 = vmor %vm1727_vm2, %vm1728_vm0  ;;  %vm1743_vm4 = vweird.f32 %v3137_v48 }
 0x47a   : > { %v1724_v24 = vsub.f32 1.0, %v1723_v25  ;;  %v1812_v49 = vmul.f32 %v1705_v38, %v3096_v53  ;;  %v1748_v47 = vand.u32 2147483648, %v3120_v56  ;;  %v1763_v39 = vand.u32 2147483648, %v3132_v46  ;;  %vm3212_vm8 = vmor %vm1742_vm11, %vm1743_vm4 }
 0x47b   : > { %v1655_v43 = vpop.f32.mrf.mxu2  ;;  %v1739_v45 = vsub.f32 1.0, %v1738_v12  ;;  %vm1757_vm9 = vweird.f32 %v3132_v46  ;;  %vm3221_vm10 = vcmp.eq.f32.partialorder %v1746_v3, 8.507059e+37 }
 0x47c   : > { %v3142_v28 = vadd.f32 %v3093_v23, %v1655_v43  ;;  %v1725_v6 = vmul.f32 %v3134_v41, %v1724_v24  ;;  %v1749_v18 = vor.u32 1.1754944e-38, %v1748_v47  ;;  %v1764_v12 = vor.u32 1.1754944e-38, %v1763_v39 }
 0x47d   : > { %v1740_v9 = vmul.f32 %v3137_v48, %v1739_v45  ;;  %v1820_v61 = vsel %vm967_vm5, %v1812_v49, 0.0 }
 0x47e   : > { %v2234_v63 = vpop.eup %2233  ;;  %v2032_v2 = vmul.f32 -1.442695, %v3142_v28  ;;  %v1726_v7 = vadd.f32 %v3134_v41, %v1725_v6 }
 0x47f   : > { %v3145_v20 = vpop.eup %2235  ;;  %v3150_v13 = vadd.f32 1.0, %v2234_v63  ;;  %v1741_v33 = vadd.f32 %v3137_v48, %v1740_v9 }
 0x480   : > { %v1753_v35 = vmul.f32 %v3145_v20, %v3132_v46  ;;  %2237 = vpow2.f32 %v2032_v2  ;;  %v1730_v53 = vsel %vm3195_vm3, %v3134_v41, %v1726_v7  ;;  %vm1758_vm6 = vweird.f32 %v3145_v20 }
 0x481   : > { %2239 = vrcp.f32 %v3150_v13  ;;  %v1761_v41 = vand.u32 2147483647, %v3132_v46  ;;  %v1735_v25 = vsel %vm1732_vm7, %v1734_v52, %v1730_v53  ;;  %v1745_v56 = vsel %vm3212_vm8, %v3137_v48, %v1741_v33  ;;  %vm3227_vm12 = vmor %vm1757_vm9, %vm1758_vm6 }
 0x482   : > { %v1754_v58 = vsub.f32 1.0, %v1753_v35  ;;  %v1778_v32 = vand.u32 2147483648, %v3150_v13  ;;  %v1776_v24 = vand.u32 2147483647, %v3150_v13  ;;  %v1814_v50 = vmul.f32 %v1735_v25, %v3104_v59 }
 0x483   : > { %v1657_v1 = vpop.f32.mrf.mxu2  ;;  %vm1762_vm14 = vcmp.eq.f32.partialorder %v1761_v41, 8.507059e+37 }
 0x484   : > { %v3165_v60 = vadd.f32 %v3093_v23, %v1657_v1  ;;  %v1715_v23 = vsel %vm3170_vm15, %v3123_v31, %v1711_v30  ;;  %v1755_v0 = vmul.f32 %v3145_v20, %v1754_v58  ;;  %vm1772_vm15 = vweird.f32 %v3150_v13 }
 0x485   : > { %v1720_v57 = vsel %vm1717_vm1, %v1719_v34, %v1715_v23  ;;  %v1779_v55 = vor.u32 1.1754944e-38, %v1778_v32  ;;  %vm1777_vm2 = vcmp.eq.f32.partialorder %v1776_v24, 8.507059e+37 }
 0x486   : > { %v2238_v62 = vpop.eup %2237  ;;  %v2033_v26 = vmul.f32 -1.442695, %v3165_v60  ;;  %v1756_v16 = vadd.f32 %v3145_v20, %v1755_v0  ;;  %v1813_v36 = vmul.f32 %v1720_v57, %v3100_v5 }
 0x487   : > { %v3175_v8 = vpop.eup %2239  ;;  %v3182_v10 = vadd.f32 1.0, %v2238_v62 }
 0x488   : > { %v1768_v44 = vmul.f32 %v3175_v8, %v3150_v13  ;;  %2241 = vpow2.f32 %v2033_v26  ;;  %v1760_v46 = vsel %vm3227_vm12, %v3145_v20, %v1756_v16  ;;  %vm1773_vm13 = vweird.f32 %v3175_v8 }
 0x489   : > { %2243 = vrcp.f32 %v3182_v10  ;;  %v1750_v20 = vsel %vm3221_vm10, %v1749_v18, %v1745_v56  ;;  %v1765_v37 = vsel %vm1762_vm14, %v1764_v12, %v1760_v46  ;;  %vm3243_vm0 = vmor %vm1772_vm15, %vm1773_vm13  ;;  %v1793_v30 = vand.u32 2147483648, %v3182_v10 }
 0x48a   : > { %v1769_v4 = vsub.f32 1.0, %v1768_v44  ;;  %v1791_v13 = vand.u32 2147483647, %v3182_v10  ;;  %v1821_v59 = vsel %vm967_vm5, %v1813_v36, 0.0  ;;  %v1815_v6 = vmul.f32 %v1750_v20, %v3108_v42 }
 0x48b   : > { %vm1787_vm3 = vweird.f32 %v3182_v10  ;;  %v1816_v62 = vmul.f32 %v1765_v37, %v3114_v22  ;;  %v1794_v19 = vor.u32 1.1754944e-38, %v1793_v30  ;;  %v1823_v26 = vsel %vm967_vm5, %v1814_v50, 0.0 }
 0x48c   : > { %v1770_v31 = vmul.f32 %v3175_v8, %v1769_v4  ;;  %vm1792_vm6 = vcmp.eq.f32.partialorder %v1791_v13, 8.507059e+37  ;;  %v1822_v9 = vadd.f32 %v1821_v59, %v1820_v61  ;;  %v1825_v42 = vsel %vm967_vm5, %v1815_v6, 0.0 }
 0x48d   : > { %v1827_v34 = vsel %vm967_vm5, %v1816_v62, 0.0  ;;  %vm1842_vm10 = vcmask 516096  }
 0x48e   : > { %v2242_v29 = vpop.eup %2241  ;;  %v1771_v17 = vadd.f32 %v3175_v8, %v1770_v31  ;;  %v1824_v44 = vadd.f32 %v1823_v26, %v1822_v9 }
 0x48f   : > { %v2244_v43 = vpop.eup %2243  ;;  %v1691_v2 = vadd.f32 1.0, %v2242_v29 }
 0x490   : > { %v1783_v48 = vmul.f32 %v2244_v43, %v3182_v10  ;;  %v1775_v45 = vsel %vm3243_vm0, %v3175_v8, %v1771_v17  ;;  %vm1788_vm1 = vweird.f32 %v2244_v43  ;;  %v1826_v4 = vadd.f32 %v1825_v42, %v1824_v44 }
 0x491   : > { %2245 = vrcp.f32 %v1691_v2  ;;  %v1780_v38 = vsel %vm1777_vm2, %v1779_v55, %v1775_v45  ;;  %vm1789_vm4 = vmor %vm1787_vm3, %vm1788_vm1  ;;  %v1808_v11 = vand.u32 2147483648, %v1691_v2  ;;  %v1806_v14 = vand.u32 2147483647, %v1691_v2 }
 0x492   : > { %v1784_v35 = vsub.f32 1.0, %v1783_v48  ;;  %v1817_v0 = vmul.f32 %v1780_v38, %v3126_v27  ;;  %vm1802_vm7 = vweird.f32 %v1691_v2  ;;  %v1828_v33 = vadd.f32 %v1827_v34, %v1826_v4 }
 0x493   : > { %v1809_v27 = vor.u32 1.1754944e-38, %v1808_v11  ;;  %vm1807_vm9 = vcmp.eq.f32.partialorder %v1806_v14, 8.507059e+37 }
 0x494   : > { %v1785_v1 = vmul.f32 %v2244_v43, %v1784_v35  ;;  %v1829_v57 = vsel %vm967_vm5, %v1817_v0, 0.0 }
 0x495   : > { %v1830_v16 = vadd.f32 %v1829_v57, %v1828_v33 }
 0x496   : > { %v1786_v58 = vadd.f32 %v2244_v43, %v1785_v1 }
 0x497   : > { %v2246_v15 = vpop.eup %2245 }
 0x498   : > { %v1790_v8 = vsel %vm1789_vm4, %v2244_v43, %v1786_v58  ;;  %v1798_v23 = vmul.f32 %v2246_v15, %v1691_v2  ;;  %vm1803_vm11 = vweird.f32 %v2246_v15 }
 0x499   : > { %v1795_v7 = vsel %vm1792_vm6, %v1794_v19, %v1790_v8  ;;  %vm1804_vm8 = vmor %vm1802_vm7, %vm1803_vm11 }
 0x49a   : > { %v1799_v10 = vsub.f32 1.0, %v1798_v23  ;;  %v1818_v22 = vmul.f32 %v1795_v7, %v3142_v28 }
 0x49c   : > { %v1800_v49 = vmul.f32 %v2246_v15, %v1799_v10  ;;  %v1831_v3 = vsel %vm967_vm5, %v1818_v22, 0.0 }
 0x49d   : > { %v1832_v52 = vadd.f32 %v1831_v3, %v1830_v16 }
 0x49e   : > { %v1801_v21 = vadd.f32 %v2246_v15, %v1800_v49 }
 0x4a0   : > { %v1805_v53 = vsel %vm1804_vm8, %v2246_v15, %v1801_v21 }
 0x4a1   : > { %v1810_v31 = vsel %vm1807_vm9, %v1809_v27, %v1805_v53 }
 0x4a2   : > { %v1819_v28 = vmul.f32 %v1810_v31, %v3165_v60 }
 0x4a4   : > { %v1833_v47 = vsel %vm967_vm5, %v1819_v28, 0.0 }
 0x4a5   : > { %v1834_v39 = vadd.f32 %v1833_v47, %v1832_v52 }
 0x4a7   : > { %v1835_v29 = vrot.slane %v1834_v39, 4 }
 0x4a9   : > { %v1836_v36 = vadd.f32 %v1835_v29, %v1834_v39 }
 0x4ab   : > { %v1837_v40 = vrot.slane %v1836_v36, 2 }
 0x4ad   : > { %v1838_v41 = vadd.f32 %v1837_v40, %v1836_v36 }
 0x4af   : > { %v1839_v43 = vrot.slane %v1838_v41, 1 }
 0x4b1   : > { %v1840_v25 = vadd.f32 %v1839_v43, %v1838_v41 }
 0x4b3   : > { %v1841_v60 = vmul.f32 %v1840_v25, %v3040_v54 }
 0x4b5   : > { %1843 = vst.msk [vmem:[%s486_s26] sm:$0x1] %vm1842_vm10, %v1841_v60 }
 0x4b6   : > { %2274 = shalt.err (!%p2271_p3)
}
 0x4b7   : > { %2053 = dma.vmem_to_hbm [thread:$0]  (%p2432_p5), %s1856_s30, 16, %s1858_s16, %s1845_s17  }
 0x4b8 PF: > { %p2059_p4 = scmp.ge.s32.totalorder %s2309_s21, 2  ;;  %s1869_s20 = sand.u32 1, %s2297_s18  }
 0x4b9   : > { %s1870_s26 = scalar_lea.sflag [#allocation4], %s1869_s20 }
 0x4ba   : > { %p2056_p7 = pnand %p2059_p4, %p2436_p6 }
 0x4bc   : > { %p2057_p8 = pneg %p2056_p7 }
 0x4be   : > { %2292 = dma.done.wait (%p2057_p8), %s1870_s26, 16  }
 0x4bf   : > { %2294 = vsyncadd (%p2057_p8), %s1870_s26, 4294967280  ;;  %s3365_s21 = sld [smem:[#allocation7_spill]]  ;;  %s3368_s18 = smov %s2301_s19 }
 0x4c0   : > { %s3366_s0 = sld [smem:[#allocation6_spill]] }
 0x4c1   : > { %s3367_s20 = sld [smem:[#allocation8_spill]] }
 0x4c5   : > { %p25_p9 = scmp.ge.s32.totalorder %s3365_s21, 4  }
 0x4c6   : > { %s3369_s19 = smov %s3366_s0 }
 0x4c7   :  { %27 = sbr.rel (!%p25_p9) target bundleno = 6 (0x6), region = 116 }
 0x4cc   :  { %1875 = vsyncpa [#allocation4], 1 }
 0x4cd   :  { %1877 = vsyncpa [#allocation4 + $0x1], 1 }

</bundles_post_ra>
